<compile_context>
chip_gen: v5e
topology: v5e:2x2
jax: 0.10.0
libtpu: 0.0.40
codegen_flags: <defaults>
</compile_context>

<pallas_src>
import math

import numpy as np
import jax
import jax.numpy as jnp
from jax.experimental import pallas as pl
from jax.experimental.pallas import tpu as pltpu

# ---- small synthetic config (mirrors GPTConfig fields, scaled down) ----
VOCAB = 256          # multiple of 128 -> lane-dense logits store
BLOCK_SIZE = 16
N_EMBD = 32
N_LAYER = 2
N_HEAD = 4
HEAD_DIM = N_EMBD // N_HEAD
LN_EPS = 1e-5


# -------------------- in-kernel helpers (traced into the kernel) --------------------

def _layernorm(x, g, b):
    mu = jnp.mean(x, axis=-1, keepdims=True)
    xc = x - mu
    var = jnp.mean(xc * xc, axis=-1, keepdims=True)
    return xc * jax.lax.rsqrt(var + LN_EPS) * g + b


def _gelu_tanh(x):
    # nn.GELU(approximate='tanh')
    c = math.sqrt(2.0 / math.pi)
    return 0.5 * x * (1.0 + jnp.tanh(c * (x + 0.044715 * x * x * x)))


# -------------------- fused GPT kernel (single invocation, grid=()) --------------------
# Operands (all full-array VMEM blocks):
#   x        : (B*T, C)      embedded input (token + positional)
#   mask     : (B*T, B*T)    additive block-diagonal causal bias (0 / -1e30)
#   vec      : (L, 8, 128)   packed per-layer vectors (ln1 g/b, b_qkv, b_proj,
#                            ln2 g/b, fc_b, mp_b), one (8,128) tile per layer
#   wqkv     : (L, C, 3C)    c_attn weight (lane-dense, original layout)
#   wproj    : (L, C, C)     attn c_proj weight
#   fcw      : (L, C, 4C)    mlp c_fc weight
#   mpw      : (L, 4C, C)    mlp c_proj weight
#   lnf      : (2, C)        final layernorm gain/bias
#   wte      : (VOCAB, C)    tied embedding / lm_head weight
#   out      : (B*T, VOCAB)  logits

def _gpt_fused_kernel(x_ref, mask_ref, vec_ref, wqkv_ref, wproj_ref, fcw_ref,
                      mpw_ref, lnf_ref, wte_ref, out_ref):
    C = N_EMBD
    Dh = HEAD_DIM
    scale = 1.0 / math.sqrt(Dh)

    x = x_ref[...]                       # (BT, C) f32
    mask_bias = mask_ref[...]            # (BT, BT) f32, 0 where allowed, -1e30 elsewhere

    def layer_body(l, x):
        vecs = vec_ref[l]                # (8, 128) f32, one tile of packed vectors
        ln1g, ln1b = vecs[0:1, :C], vecs[1:2, :C]
        bqkv = vecs[2:3, :3 * C]
        bproj = vecs[3:4, :C]
        ln2g, ln2b = vecs[4:5, :C], vecs[5:6, :C]
        fcb = vecs[6:7, :4 * C]
        mpb = vecs[7:8, :C]

        # ---------------- causal self-attention ----------------
        h1 = _layernorm(x, ln1g, ln1b)                                   # (BT, C)
        qkv = jnp.dot(h1, wqkv_ref[l],
                      preferred_element_type=jnp.float32) + bqkv         # (BT, 3C)
        q_all, k_all, v_all = qkv[:, :C], qkv[:, C:2 * C], qkv[:, 2 * C:3 * C]

        ys = []
        for h in range(N_HEAD):                       # static, tiny head loop
            sl = slice(h * Dh, (h + 1) * Dh)
            q, k, v = q_all[:, sl], k_all[:, sl], v_all[:, sl]
            # q @ k^T (transposed-RHS dot_general: no transpose copy)
            s = jax.lax.dot_general(q, k, (((1,), (1,)), ((), ())),
                                    preferred_element_type=jnp.float32)
            s = s * scale + mask_bias                 # block-diag causal mask fold
            m = jnp.max(s, axis=-1, keepdims=True)
            p = jnp.exp(s - m)
            # approx reciprocal runs on the EUP slot (~1e-3 rel error vs exact)
            p = p * pl.reciprocal(jnp.sum(p, axis=-1, keepdims=True), approx=True)
            ys.append(jnp.dot(p, v, preferred_element_type=jnp.float32))  # (BT, Dh)

        y = jnp.concatenate(ys, axis=-1)                                  # (BT, C)
        x = x + jnp.dot(y, wproj_ref[l],
                        preferred_element_type=jnp.float32) + bproj       # residual

        # ---------------- MLP ----------------
        h2 = _layernorm(x, ln2g, ln2b)
        g = jnp.dot(h2, fcw_ref[l], preferred_element_type=jnp.float32) + fcb
        g = _gelu_tanh(g)
        x = x + jnp.dot(g, mpw_ref[l], preferred_element_type=jnp.float32) + mpb
        return x

    x = jax.lax.fori_loop(0, N_LAYER, layer_body, x, unroll=True)

    # ---------------- final LN + tied lm_head ----------------
    lnf = lnf_ref[...]
    hf = _layernorm(x, lnf[0:1, :], lnf[1:2, :])
    logits = jax.lax.dot_general(hf, wte_ref[...], (((1,), (1,)), ((), ())),
                                 preferred_element_type=jnp.float32)      # hf @ wte^T
    out_ref[...] = logits


# -------------------- parameter init (matches PyTorch init scheme) --------------------

def init_params(key):
    std = 0.02
    proj_std = 0.02 * (2 * N_LAYER) ** (-0.5)   # NANOGPT_SCALE'd projections

    def nrm(k, shape, s):
        return (s * jax.random.normal(k, shape)).astype(jnp.float32)

    keys = jax.random.split(key, 2 + 4 * N_LAYER)
    params = {
        'wte': nrm(keys[0], (VOCAB, N_EMBD), std),     # tied with lm_head
        'wpe': nrm(keys[1], (BLOCK_SIZE, N_EMBD), std),
        'lnf_g': jnp.ones((N_EMBD,), jnp.float32),
        'lnf_b': jnp.zeros((N_EMBD,), jnp.float32),
        'layers': [],
    }
    for i in range(N_LAYER):
        k0, k1, k2, k3 = keys[2 + 4 * i: 6 + 4 * i]
        params['layers'].append({
            'ln1_g': jnp.ones((N_EMBD,), jnp.float32),
            'ln1_b': jnp.zeros((N_EMBD,), jnp.float32),
            'attn_w': nrm(k0, (N_EMBD, 3 * N_EMBD), std),        # c_attn (in, out)
            'attn_b': jnp.zeros((3 * N_EMBD,), jnp.float32),
            'attn_proj_w': nrm(k1, (N_EMBD, N_EMBD), proj_std),  # attn c_proj
            'attn_proj_b': jnp.zeros((N_EMBD,), jnp.float32),
            'ln2_g': jnp.ones((N_EMBD,), jnp.float32),
            'ln2_b': jnp.zeros((N_EMBD,), jnp.float32),
            'fc_w': nrm(k2, (N_EMBD, 4 * N_EMBD), std),          # mlp c_fc
            'fc_b': jnp.zeros((4 * N_EMBD,), jnp.float32),
            'mlp_proj_w': nrm(k3, (4 * N_EMBD, N_EMBD), proj_std),  # mlp c_proj
            'mlp_proj_b': jnp.zeros((N_EMBD,), jnp.float32),
        })
    return params


def pack_params(params):
    """Stack per-layer params along a leading layer axis (lane-dense, original
    matmul layouts) and coalesce all per-layer 1-D vectors into one packed
    (L, 8, 128) array (one VMEM tile per layer). Done once on the host."""
    L, C = N_LAYER, N_EMBD
    assert 4 * C <= 128 and 3 * C <= 128, "vector packing assumes 4*C <= 128"

    def stack(name):
        return jnp.stack([lp[name] for lp in params['layers']], axis=0)

    vec = jnp.zeros((L, 8, 128), jnp.float32)
    vec = vec.at[:, 0, :C].set(stack('ln1_g'))
    vec = vec.at[:, 1, :C].set(stack('ln1_b'))
    vec = vec.at[:, 2, :3 * C].set(stack('attn_b'))
    vec = vec.at[:, 3, :C].set(stack('attn_proj_b'))
    vec = vec.at[:, 4, :C].set(stack('ln2_g'))
    vec = vec.at[:, 5, :C].set(stack('ln2_b'))
    vec = vec.at[:, 6, :4 * C].set(stack('fc_b'))
    vec = vec.at[:, 7, :C].set(stack('mlp_proj_b'))

    return {
        'wte': params['wte'],                              # (VOCAB, C)
        'wpe': params['wpe'],                              # (BLOCK_SIZE, C)
        'vec': vec,                                        # (L, 8, 128)
        'w_qkv': stack('attn_w'),                          # (L, C, 3C)  lane-dense
        'w_proj': stack('attn_proj_w'),                    # (L, C, C)
        'fc_w': stack('fc_w'),                             # (L, C, 4C)
        'mp_w': stack('mlp_proj_w'),                       # (L, 4C, C)
        'lnf': jnp.stack([params['lnf_g'], params['lnf_b']], axis=0),  # (2, C)
    }


# -------------------- model forward (one fused pallas_call, grid=()) --------------------

_KERNEL_WEIGHTS = ('vec', 'w_qkv', 'w_proj', 'fc_w', 'mp_w', 'lnf', 'wte')


def gpt_forward(packed, idx):
    B, T = idx.shape
    assert T <= BLOCK_SIZE, "Cannot forward, model block size is exhausted."
    C = N_EMBD
    BT = B * T

    # Embedding gather + positional add stay in plain JAX (tiny; pulling the
    # gather in-kernel would need an SMEM scalar-prefetched idx + per-row DMA).
    # TODO(synk): in-kernel embedding gather via scalar-prefetched idx not implemented.
    tok = jnp.take(packed['wte'], idx, axis=0)                     # (B, T, C)
    pos = packed['wpe'][:T]
    x = (tok + pos[None, :, :]).reshape(BT, C).astype(jnp.float32)  # drop(p=0.0) = id

    # Block-diagonal causal mask as an additive bias; compile-time constant
    # (B, T are static), so no in-kernel iota/div work at all.
    r = np.arange(BT)
    allowed = (r[None, :] <= r[:, None]) & ((r[:, None] // T) == (r[None, :] // T))
    mask_bias = jnp.asarray(np.where(allowed, 0.0, -1e30), dtype=jnp.float32)

    operands = [x, mask_bias] + [packed[k] for k in _KERNEL_WEIGHTS]
    vmem_spec = pl.BlockSpec(memory_space=pltpu.MemorySpace.VMEM)

    # Advisory cost estimate (helps XLA schedule around the custom call).
    flops_layer = (2 * BT * C * 3 * C        # qkv projection
                   + 2 * BT * BT * C         # q @ k^T (all heads)
                   + 2 * BT * BT * C         # p @ v   (all heads)
                   + 2 * BT * C * C          # attn c_proj
                   + 2 * BT * C * 4 * C      # mlp c_fc
                   + 2 * BT * 4 * C * C)     # mlp c_proj
    flops = N_LAYER * flops_layer + 2 * BT * C * VOCAB
    transcendentals = N_LAYER * (N_HEAD * BT * BT + BT * 4 * C)
    bytes_accessed = sum(int(v.size) * 4 for v in operands) + BT * VOCAB * 4

    logits2d = pl.pallas_call(
        _gpt_fused_kernel,
        out_shape=jax.ShapeDtypeStruct((BT, VOCAB), jnp.float32),
        in_specs=[vmem_spec] * len(operands),
        out_specs=vmem_spec,
        cost_estimate=pl.CostEstimate(flops=flops,
                                      transcendentals=transcendentals,
                                      bytes_accessed=bytes_accessed),
        # NOTE: at real GPT-2 scale, add K/N tiling of fc_w/mp_w and set
        # compiler_params=pltpu.CompilerParams(vmem_limit_bytes=...) (esp. v7x).
    )(*operands)

    return logits2d.reshape(B, T, VOCAB)
    # TODO(synk): cross-entropy loss path (targets=...) not implemented; forward returns logits only.


if __name__ == "__main__":
    key = jax.random.PRNGKey(0)
    pkey, ikey = jax.random.split(key)
    params = init_params(pkey)
    packed = pack_params(params)     # one-time host-side packing (outside jit)

    B, T = 2, 8
    idx = jax.random.randint(ikey, (B, T), 0, VOCAB, dtype=jnp.int32)

    logits = jax.jit(gpt_forward)(packed, idx)
    logits = jax.block_until_ready(logits)
    assert logits.shape == (B, T, VOCAB)
    assert bool(jnp.all(jnp.isfinite(logits)))
    print("KERNEL_OK")
</pallas_src>

<mosaic_0001>
module attributes {stable_mosaic.version = 11 : i64} {
  func.func @_gpt_fused_kernel(%arg0: memref<16x32xf32, #tpu.memory_space<vmem>>, %arg1: memref<16x16xf32, #tpu.memory_space<vmem>>, %arg2: memref<2x8x128xf32, #tpu.memory_space<vmem>>, %arg3: memref<2x32x96xf32, #tpu.memory_space<vmem>>, %arg4: memref<2x32x32xf32, #tpu.memory_space<vmem>>, %arg5: memref<2x32x128xf32, #tpu.memory_space<vmem>>, %arg6: memref<2x128x32xf32, #tpu.memory_space<vmem>>, %arg7: memref<2x32xf32, #tpu.memory_space<vmem>>, %arg8: memref<256x32xf32, #tpu.memory_space<vmem>>, %arg9: memref<16x256xf32, #tpu.memory_space<vmem>>) attributes {dimension_semantics = [], scalar_prefetch = 0 : i64, scratch_operands = 0 : i64, tpu.core_type = #tpu.core_type<tc>} {
    %c0 = arith.constant 0 : index
    %c0_0 = arith.constant 0 : index
    %0 = vector.load %arg0[%c0, %c0_0] : memref<16x32xf32, #tpu.memory_space<vmem>>, vector<16x32xf32>
    %c0_1 = arith.constant 0 : index
    %c0_2 = arith.constant 0 : index
    %1 = vector.load %arg1[%c0_1, %c0_2] : memref<16x16xf32, #tpu.memory_space<vmem>>, vector<16x16xf32>
    %c0_i32 = arith.constant 0 : i32
    %2 = arith.index_cast %c0_i32 : i32 to index
    %c0_3 = arith.constant 0 : index
    %c0_4 = arith.constant 0 : index
    %3 = vector.load %arg2[%2, %c0_3, %c0_4] : memref<2x8x128xf32, #tpu.memory_space<vmem>>, vector<1x8x128xf32>
    %4 = vector.shape_cast %3 : vector<1x8x128xf32> to vector<8x128xf32>
    %5 = vector.extract_strided_slice %4 {offsets = [0, 0], sizes = [1, 32], strides = [1, 1]} : vector<8x128xf32> to vector<1x32xf32>
    %6 = vector.extract_strided_slice %4 {offsets = [1, 0], sizes = [1, 32], strides = [1, 1]} : vector<8x128xf32> to vector<1x32xf32>
    %7 = vector.extract_strided_slice %4 {offsets = [2, 0], sizes = [1, 96], strides = [1, 1]} : vector<8x128xf32> to vector<1x96xf32>
    %8 = vector.extract_strided_slice %4 {offsets = [3, 0], sizes = [1, 32], strides = [1, 1]} : vector<8x128xf32> to vector<1x32xf32>
    %9 = vector.extract_strided_slice %4 {offsets = [4, 0], sizes = [1, 32], strides = [1, 1]} : vector<8x128xf32> to vector<1x32xf32>
    %10 = vector.extract_strided_slice %4 {offsets = [5, 0], sizes = [1, 32], strides = [1, 1]} : vector<8x128xf32> to vector<1x32xf32>
    %11 = vector.extract_strided_slice %4 {offsets = [6, 0], sizes = [1, 128], strides = [1, 1]} : vector<8x128xf32> to vector<1x128xf32>
    %12 = vector.extract_strided_slice %4 {offsets = [7, 0], sizes = [1, 32], strides = [1, 1]} : vector<8x128xf32> to vector<1x32xf32>
    %cst = arith.constant dense<0.000000e+00> : vector<16xf32>
    %13 = vector.multi_reduction <add>, %0, %cst [1] : vector<16x32xf32> to vector<16xf32>
    %14 = vector.shape_cast %13 : vector<16xf32> to vector<16x1xf32>
    %cst_5 = arith.constant 3.200000e+01 : f32
    %15 = vector.broadcast %cst_5 : f32 to vector<16x1xf32>
    %16 = arith.divf %14, %15 : vector<16x1xf32>
    %17 = vector.broadcast %16 : vector<16x1xf32> to vector<16x32xf32>
    %18 = arith.subf %0, %17 : vector<16x32xf32>
    %19 = arith.mulf %18, %18 : vector<16x32xf32>
    %cst_6 = arith.constant dense<0.000000e+00> : vector<16xf32>
    %20 = vector.multi_reduction <add>, %19, %cst_6 [1] : vector<16x32xf32> to vector<16xf32>
    %21 = vector.shape_cast %20 : vector<16xf32> to vector<16x1xf32>
    %cst_7 = arith.constant 3.200000e+01 : f32
    %22 = vector.broadcast %cst_7 : f32 to vector<16x1xf32>
    %23 = arith.divf %21, %22 : vector<16x1xf32>
    %cst_8 = arith.constant 9.99999974E-6 : f32
    %24 = vector.broadcast %cst_8 : f32 to vector<16x1xf32>
    %25 = arith.addf %23, %24 : vector<16x1xf32>
    %26 = math.rsqrt %25 : vector<16x1xf32>
    %27 = vector.broadcast %26 : vector<16x1xf32> to vector<16x32xf32>
    %28 = arith.mulf %18, %27 : vector<16x32xf32>
    %29 = vector.broadcast %5 : vector<1x32xf32> to vector<16x32xf32>
    %30 = arith.mulf %28, %29 : vector<16x32xf32>
    %31 = vector.broadcast %6 : vector<1x32xf32> to vector<16x32xf32>
    %32 = arith.addf %30, %31 : vector<16x32xf32>
    %33 = arith.index_cast %c0_i32 : i32 to index
    %c0_9 = arith.constant 0 : index
    %c0_10 = arith.constant 0 : index
    %34 = vector.load %arg3[%33, %c0_9, %c0_10] : memref<2x32x96xf32, #tpu.memory_space<vmem>>, vector<1x32x96xf32>
    %35 = vector.shape_cast %34 : vector<1x32x96xf32> to vector<32x96xf32>
    %cst_11 = arith.constant dense<0.000000e+00> : vector<16x96xf32>
    %36 = tpu.matmul %32, %35, %cst_11 {dimension_numbers = #tpu.dot_dimension_numbers<[1], [0], [0], [1], [0, 0, 1, 1], [], []>} : vector<16x32xf32>, vector<32x96xf32>, vector<16x96xf32> -> vector<16x96xf32>
    %37 = vector.broadcast %7 : vector<1x96xf32> to vector<16x96xf32>
    %38 = arith.addf %36, %37 : vector<16x96xf32>
    %39 = vector.extract_strided_slice %38 {offsets = [0, 0], sizes = [16, 32], strides = [1, 1]} : vector<16x96xf32> to vector<16x32xf32>
    %40 = vector.extract_strided_slice %38 {offsets = [0, 32], sizes = [16, 32], strides = [1, 1]} : vector<16x96xf32> to vector<16x32xf32>
    %41 = vector.extract_strided_slice %38 {offsets = [0, 64], sizes = [16, 32], strides = [1, 1]} : vector<16x96xf32> to vector<16x32xf32>
    %42 = vector.extract_strided_slice %39 {offsets = [0, 0], sizes = [16, 8], strides = [1, 1]} : vector<16x32xf32> to vector<16x8xf32>
    %43 = vector.extract_strided_slice %40 {offsets = [0, 0], sizes = [16, 8], strides = [1, 1]} : vector<16x32xf32> to vector<16x8xf32>
    %44 = vector.extract_strided_slice %41 {offsets = [0, 0], sizes = [16, 8], strides = [1, 1]} : vector<16x32xf32> to vector<16x8xf32>
    %cst_12 = arith.constant dense<0.000000e+00> : vector<16x16xf32>
    %45 = tpu.matmul %42, %43, %cst_12 {dimension_numbers = #tpu.dot_dimension_numbers<[1], [1], [0], [0], [0, 0, 1, 0], [], []>} : vector<16x8xf32>, vector<16x8xf32>, vector<16x16xf32> -> vector<16x16xf32>
    %cst_13 = arith.constant 0.353553385 : f32
    %46 = vector.broadcast %cst_13 : f32 to vector<16x16xf32>
    %47 = arith.mulf %45, %46 : vector<16x16xf32>
    %48 = arith.addf %47, %1 : vector<16x16xf32>
    %cst_14 = arith.constant dense<0xFF800000> : vector<16xf32>
    %49 = vector.multi_reduction <maximumf>, %48, %cst_14 [1] : vector<16x16xf32> to vector<16xf32>
    %50 = vector.shape_cast %49 : vector<16xf32> to vector<16x1xf32>
    %51 = vector.broadcast %50 : vector<16x1xf32> to vector<16x16xf32>
    %52 = arith.subf %48, %51 : vector<16x16xf32>
    %53 = math.exp %52 : vector<16x16xf32>
    %cst_15 = arith.constant dense<0.000000e+00> : vector<16xf32>
    %54 = vector.multi_reduction <add>, %53, %cst_15 [1] : vector<16x16xf32> to vector<16xf32>
    %55 = vector.shape_cast %54 : vector<16xf32> to vector<16x1xf32>
    %56 = tpu.reciprocal %55 {approx = true} : vector<16x1xf32> -> vector<16x1xf32>
    %57 = vector.broadcast %56 : vector<16x1xf32> to vector<16x16xf32>
    %58 = arith.mulf %53, %57 : vector<16x16xf32>
    %cst_16 = arith.constant dense<0.000000e+00> : vector<16x8xf32>
    %59 = tpu.matmul %58, %44, %cst_16 {dimension_numbers = #tpu.dot_dimension_numbers<[1], [0], [0], [1], [0, 0, 1, 1], [], []>} : vector<16x16xf32>, vector<16x8xf32>, vector<16x8xf32> -> vector<16x8xf32>
    %60 = vector.extract_strided_slice %39 {offsets = [0, 8], sizes = [16, 8], strides = [1, 1]} : vector<16x32xf32> to vector<16x8xf32>
    %61 = vector.extract_strided_slice %40 {offsets = [0, 8], sizes = [16, 8], strides = [1, 1]} : vector<16x32xf32> to vector<16x8xf32>
    %62 = vector.extract_strided_slice %41 {offsets = [0, 8], sizes = [16, 8], strides = [1, 1]} : vector<16x32xf32> to vector<16x8xf32>
    %cst_17 = arith.constant dense<0.000000e+00> : vector<16x16xf32>
    %63 = tpu.matmul %60, %61, %cst_17 {dimension_numbers = #tpu.dot_dimension_numbers<[1], [1], [0], [0], [0, 0, 1, 0], [], []>} : vector<16x8xf32>, vector<16x8xf32>, vector<16x16xf32> -> vector<16x16xf32>
    %cst_18 = arith.constant 0.353553385 : f32
    %64 = vector.broadcast %cst_18 : f32 to vector<16x16xf32>
    %65 = arith.mulf %63, %64 : vector<16x16xf32>
    %66 = arith.addf %65, %1 : vector<16x16xf32>
    %cst_19 = arith.constant dense<0xFF800000> : vector<16xf32>
    %67 = vector.multi_reduction <maximumf>, %66, %cst_19 [1] : vector<16x16xf32> to vector<16xf32>
    %68 = vector.shape_cast %67 : vector<16xf32> to vector<16x1xf32>
    %69 = vector.broadcast %68 : vector<16x1xf32> to vector<16x16xf32>
    %70 = arith.subf %66, %69 : vector<16x16xf32>
    %71 = math.exp %70 : vector<16x16xf32>
    %cst_20 = arith.constant dense<0.000000e+00> : vector<16xf32>
    %72 = vector.multi_reduction <add>, %71, %cst_20 [1] : vector<16x16xf32> to vector<16xf32>
    %73 = vector.shape_cast %72 : vector<16xf32> to vector<16x1xf32>
    %74 = tpu.reciprocal %73 {approx = true} : vector<16x1xf32> -> vector<16x1xf32>
    %75 = vector.broadcast %74 : vector<16x1xf32> to vector<16x16xf32>
    %76 = arith.mulf %71, %75 : vector<16x16xf32>
    %cst_21 = arith.constant dense<0.000000e+00> : vector<16x8xf32>
    %77 = tpu.matmul %76, %62, %cst_21 {dimension_numbers = #tpu.dot_dimension_numbers<[1], [0], [0], [1], [0, 0, 1, 1], [], []>} : vector<16x16xf32>, vector<16x8xf32>, vector<16x8xf32> -> vector<16x8xf32>
    %78 = vector.extract_strided_slice %39 {offsets = [0, 16], sizes = [16, 8], strides = [1, 1]} : vector<16x32xf32> to vector<16x8xf32>
    %79 = vector.extract_strided_slice %40 {offsets = [0, 16], sizes = [16, 8], strides = [1, 1]} : vector<16x32xf32> to vector<16x8xf32>
    %80 = vector.extract_strided_slice %41 {offsets = [0, 16], sizes = [16, 8], strides = [1, 1]} : vector<16x32xf32> to vector<16x8xf32>
    %cst_22 = arith.constant dense<0.000000e+00> : vector<16x16xf32>
    %81 = tpu.matmul %78, %79, %cst_22 {dimension_numbers = #tpu.dot_dimension_numbers<[1], [1], [0], [0], [0, 0, 1, 0], [], []>} : vector<16x8xf32>, vector<16x8xf32>, vector<16x16xf32> -> vector<16x16xf32>
    %cst_23 = arith.constant 0.353553385 : f32
    %82 = vector.broadcast %cst_23 : f32 to vector<16x16xf32>
    %83 = arith.mulf %81, %82 : vector<16x16xf32>
    %84 = arith.addf %83, %1 : vector<16x16xf32>
    %cst_24 = arith.constant dense<0xFF800000> : vector<16xf32>
    %85 = vector.multi_reduction <maximumf>, %84, %cst_24 [1] : vector<16x16xf32> to vector<16xf32>
    %86 = vector.shape_cast %85 : vector<16xf32> to vector<16x1xf32>
    %87 = vector.broadcast %86 : vector<16x1xf32> to vector<16x16xf32>
    %88 = arith.subf %84, %87 : vector<16x16xf32>
    %89 = math.exp %88 : vector<16x16xf32>
    %cst_25 = arith.constant dense<0.000000e+00> : vector<16xf32>
    %90 = vector.multi_reduction <add>, %89, %cst_25 [1] : vector<16x16xf32> to vector<16xf32>
    %91 = vector.shape_cast %90 : vector<16xf32> to vector<16x1xf32>
    %92 = tpu.reciprocal %91 {approx = true} : vector<16x1xf32> -> vector<16x1xf32>
    %93 = vector.broadcast %92 : vector<16x1xf32> to vector<16x16xf32>
    %94 = arith.mulf %89, %93 : vector<16x16xf32>
    %cst_26 = arith.constant dense<0.000000e+00> : vector<16x8xf32>
    %95 = tpu.matmul %94, %80, %cst_26 {dimension_numbers = #tpu.dot_dimension_numbers<[1], [0], [0], [1], [0, 0, 1, 1], [], []>} : vector<16x16xf32>, vector<16x8xf32>, vector<16x8xf32> -> vector<16x8xf32>
    %96 = vector.extract_strided_slice %39 {offsets = [0, 24], sizes = [16, 8], strides = [1, 1]} : vector<16x32xf32> to vector<16x8xf32>
    %97 = vector.extract_strided_slice %40 {offsets = [0, 24], sizes = [16, 8], strides = [1, 1]} : vector<16x32xf32> to vector<16x8xf32>
    %98 = vector.extract_strided_slice %41 {offsets = [0, 24], sizes = [16, 8], strides = [1, 1]} : vector<16x32xf32> to vector<16x8xf32>
    %cst_27 = arith.constant dense<0.000000e+00> : vector<16x16xf32>
    %99 = tpu.matmul %96, %97, %cst_27 {dimension_numbers = #tpu.dot_dimension_numbers<[1], [1], [0], [0], [0, 0, 1, 0], [], []>} : vector<16x8xf32>, vector<16x8xf32>, vector<16x16xf32> -> vector<16x16xf32>
    %cst_28 = arith.constant 0.353553385 : f32
    %100 = vector.broadcast %cst_28 : f32 to vector<16x16xf32>
    %101 = arith.mulf %99, %100 : vector<16x16xf32>
    %102 = arith.addf %101, %1 : vector<16x16xf32>
    %cst_29 = arith.constant dense<0xFF800000> : vector<16xf32>
    %103 = vector.multi_reduction <maximumf>, %102, %cst_29 [1] : vector<16x16xf32> to vector<16xf32>
    %104 = vector.shape_cast %103 : vector<16xf32> to vector<16x1xf32>
    %105 = vector.broadcast %104 : vector<16x1xf32> to vector<16x16xf32>
    %106 = arith.subf %102, %105 : vector<16x16xf32>
    %107 = math.exp %106 : vector<16x16xf32>
    %cst_30 = arith.constant dense<0.000000e+00> : vector<16xf32>
    %108 = vector.multi_reduction <add>, %107, %cst_30 [1] : vector<16x16xf32> to vector<16xf32>
    %109 = vector.shape_cast %108 : vector<16xf32> to vector<16x1xf32>
    %110 = tpu.reciprocal %109 {approx = true} : vector<16x1xf32> -> vector<16x1xf32>
    %111 = vector.broadcast %110 : vector<16x1xf32> to vector<16x16xf32>
    %112 = arith.mulf %107, %111 : vector<16x16xf32>
    %cst_31 = arith.constant dense<0.000000e+00> : vector<16x8xf32>
    %113 = tpu.matmul %112, %98, %cst_31 {dimension_numbers = #tpu.dot_dimension_numbers<[1], [0], [0], [1], [0, 0, 1, 1], [], []>} : vector<16x16xf32>, vector<16x8xf32>, vector<16x8xf32> -> vector<16x8xf32>
    %114 = tpu.concatenate %59, %77, %95, %113 in 1 : vector<16x8xf32>, vector<16x8xf32>, vector<16x8xf32>, vector<16x8xf32> -> vector<16x32xf32>
    %115 = arith.index_cast %c0_i32 : i32 to index
    %c0_32 = arith.constant 0 : index
    %c0_33 = arith.constant 0 : index
    %116 = vector.load %arg4[%115, %c0_32, %c0_33] : memref<2x32x32xf32, #tpu.memory_space<vmem>>, vector<1x32x32xf32>
    %117 = vector.shape_cast %116 : vector<1x32x32xf32> to vector<32x32xf32>
    %cst_34 = arith.constant dense<0.000000e+00> : vector<16x32xf32>
    %118 = tpu.matmul %114, %117, %cst_34 {dimension_numbers = #tpu.dot_dimension_numbers<[1], [0], [0], [1], [0, 0, 1, 1], [], []>} : vector<16x32xf32>, vector<32x32xf32>, vector<16x32xf32> -> vector<16x32xf32>
    %119 = arith.addf %0, %118 : vector<16x32xf32>
    %120 = vector.broadcast %8 : vector<1x32xf32> to vector<16x32xf32>
    %121 = arith.addf %119, %120 : vector<16x32xf32>
    %cst_35 = arith.constant dense<0.000000e+00> : vector<16xf32>
    %122 = vector.multi_reduction <add>, %121, %cst_35 [1] : vector<16x32xf32> to vector<16xf32>
    %123 = vector.shape_cast %122 : vector<16xf32> to vector<16x1xf32>
    %cst_36 = arith.constant 3.200000e+01 : f32
    %124 = vector.broadcast %cst_36 : f32 to vector<16x1xf32>
    %125 = arith.divf %123, %124 : vector<16x1xf32>
    %126 = vector.broadcast %125 : vector<16x1xf32> to vector<16x32xf32>
    %127 = arith.subf %121, %126 : vector<16x32xf32>
    %128 = arith.mulf %127, %127 : vector<16x32xf32>
    %cst_37 = arith.constant dense<0.000000e+00> : vector<16xf32>
    %129 = vector.multi_reduction <add>, %128, %cst_37 [1] : vector<16x32xf32> to vector<16xf32>
    %130 = vector.shape_cast %129 : vector<16xf32> to vector<16x1xf32>
    %cst_38 = arith.constant 3.200000e+01 : f32
    %131 = vector.broadcast %cst_38 : f32 to vector<16x1xf32>
    %132 = arith.divf %130, %131 : vector<16x1xf32>
    %cst_39 = arith.constant 9.99999974E-6 : f32
    %133 = vector.broadcast %cst_39 : f32 to vector<16x1xf32>
    %134 = arith.addf %132, %133 : vector<16x1xf32>
    %135 = math.rsqrt %134 : vector<16x1xf32>
    %136 = vector.broadcast %135 : vector<16x1xf32> to vector<16x32xf32>
    %137 = arith.mulf %127, %136 : vector<16x32xf32>
    %138 = vector.broadcast %9 : vector<1x32xf32> to vector<16x32xf32>
    %139 = arith.mulf %137, %138 : vector<16x32xf32>
    %140 = vector.broadcast %10 : vector<1x32xf32> to vector<16x32xf32>
    %141 = arith.addf %139, %140 : vector<16x32xf32>
    %142 = arith.index_cast %c0_i32 : i32 to index
    %c0_40 = arith.constant 0 : index
    %c0_41 = arith.constant 0 : index
    %143 = vector.load %arg5[%142, %c0_40, %c0_41] : memref<2x32x128xf32, #tpu.memory_space<vmem>>, vector<1x32x128xf32>
    %144 = vector.shape_cast %143 : vector<1x32x128xf32> to vector<32x128xf32>
    %cst_42 = arith.constant dense<0.000000e+00> : vector<16x128xf32>
    %145 = tpu.matmul %141, %144, %cst_42 {dimension_numbers = #tpu.dot_dimension_numbers<[1], [0], [0], [1], [0, 0, 1, 1], [], []>} : vector<16x32xf32>, vector<32x128xf32>, vector<16x128xf32> -> vector<16x128xf32>
    %146 = vector.broadcast %11 : vector<1x128xf32> to vector<16x128xf32>
    %147 = arith.addf %145, %146 : vector<16x128xf32>
    %cst_43 = arith.constant 5.000000e-01 : f32
    %148 = vector.broadcast %cst_43 : f32 to vector<16x128xf32>
    %149 = arith.mulf %148, %147 : vector<16x128xf32>
    %cst_44 = arith.constant 4.471500e-02 : f32
    %150 = vector.broadcast %cst_44 : f32 to vector<16x128xf32>
    %151 = arith.mulf %150, %147 : vector<16x128xf32>
    %152 = arith.mulf %151, %147 : vector<16x128xf32>
    %153 = arith.mulf %152, %147 : vector<16x128xf32>
    %154 = arith.addf %147, %153 : vector<16x128xf32>
    %cst_45 = arith.constant 0.797884583 : f32
    %155 = vector.broadcast %cst_45 : f32 to vector<16x128xf32>
    %156 = arith.mulf %155, %154 : vector<16x128xf32>
    %157 = math.tanh %156 : vector<16x128xf32>
    %cst_46 = arith.constant 1.000000e+00 : f32
    %158 = vector.broadcast %cst_46 : f32 to vector<16x128xf32>
    %159 = arith.addf %158, %157 : vector<16x128xf32>
    %160 = arith.mulf %149, %159 : vector<16x128xf32>
    %161 = arith.index_cast %c0_i32 : i32 to index
    %c0_47 = arith.constant 0 : index
    %c0_48 = arith.constant 0 : index
    %162 = vector.load %arg6[%161, %c0_47, %c0_48] : memref<2x128x32xf32, #tpu.memory_space<vmem>>, vector<1x128x32xf32>
    %163 = vector.shape_cast %162 : vector<1x128x32xf32> to vector<128x32xf32>
    %cst_49 = arith.constant dense<0.000000e+00> : vector<16x32xf32>
    %164 = tpu.matmul %160, %163, %cst_49 {dimension_numbers = #tpu.dot_dimension_numbers<[1], [0], [0], [1], [0, 0, 1, 1], [], []>} : vector<16x128xf32>, vector<128x32xf32>, vector<16x32xf32> -> vector<16x32xf32>
    %165 = arith.addf %121, %164 : vector<16x32xf32>
    %166 = vector.broadcast %12 : vector<1x32xf32> to vector<16x32xf32>
    %167 = arith.addf %165, %166 : vector<16x32xf32>
    %c1_i32 = arith.constant 1 : i32
    %168 = arith.index_cast %c1_i32 : i32 to index
    %c0_50 = arith.constant 0 : index
    %c0_51 = arith.constant 0 : index
    %169 = vector.load %arg2[%168, %c0_50, %c0_51] : memref<2x8x128xf32, #tpu.memory_space<vmem>>, vector<1x8x128xf32>
    %170 = vector.shape_cast %169 : vector<1x8x128xf32> to vector<8x128xf32>
    %171 = vector.extract_strided_slice %170 {offsets = [0, 0], sizes = [1, 32], strides = [1, 1]} : vector<8x128xf32> to vector<1x32xf32>
    %172 = vector.extract_strided_slice %170 {offsets = [1, 0], sizes = [1, 32], strides = [1, 1]} : vector<8x128xf32> to vector<1x32xf32>
    %173 = vector.extract_strided_slice %170 {offsets = [2, 0], sizes = [1, 96], strides = [1, 1]} : vector<8x128xf32> to vector<1x96xf32>
    %174 = vector.extract_strided_slice %170 {offsets = [3, 0], sizes = [1, 32], strides = [1, 1]} : vector<8x128xf32> to vector<1x32xf32>
    %175 = vector.extract_strided_slice %170 {offsets = [4, 0], sizes = [1, 32], strides = [1, 1]} : vector<8x128xf32> to vector<1x32xf32>
    %176 = vector.extract_strided_slice %170 {offsets = [5, 0], sizes = [1, 32], strides = [1, 1]} : vector<8x128xf32> to vector<1x32xf32>
    %177 = vector.extract_strided_slice %170 {offsets = [6, 0], sizes = [1, 128], strides = [1, 1]} : vector<8x128xf32> to vector<1x128xf32>
    %178 = vector.extract_strided_slice %170 {offsets = [7, 0], sizes = [1, 32], strides = [1, 1]} : vector<8x128xf32> to vector<1x32xf32>
    %cst_52 = arith.constant dense<0.000000e+00> : vector<16xf32>
    %179 = vector.multi_reduction <add>, %167, %cst_52 [1] : vector<16x32xf32> to vector<16xf32>
    %180 = vector.shape_cast %179 : vector<16xf32> to vector<16x1xf32>
    %cst_53 = arith.constant 3.200000e+01 : f32
    %181 = vector.broadcast %cst_53 : f32 to vector<16x1xf32>
    %182 = arith.divf %180, %181 : vector<16x1xf32>
    %183 = vector.broadcast %182 : vector<16x1xf32> to vector<16x32xf32>
    %184 = arith.subf %167, %183 : vector<16x32xf32>
    %185 = arith.mulf %184, %184 : vector<16x32xf32>
    %cst_54 = arith.constant dense<0.000000e+00> : vector<16xf32>
    %186 = vector.multi_reduction <add>, %185, %cst_54 [1] : vector<16x32xf32> to vector<16xf32>
    %187 = vector.shape_cast %186 : vector<16xf32> to vector<16x1xf32>
    %cst_55 = arith.constant 3.200000e+01 : f32
    %188 = vector.broadcast %cst_55 : f32 to vector<16x1xf32>
    %189 = arith.divf %187, %188 : vector<16x1xf32>
    %cst_56 = arith.constant 9.99999974E-6 : f32
    %190 = vector.broadcast %cst_56 : f32 to vector<16x1xf32>
    %191 = arith.addf %189, %190 : vector<16x1xf32>
    %192 = math.rsqrt %191 : vector<16x1xf32>
    %193 = vector.broadcast %192 : vector<16x1xf32> to vector<16x32xf32>
    %194 = arith.mulf %184, %193 : vector<16x32xf32>
    %195 = vector.broadcast %171 : vector<1x32xf32> to vector<16x32xf32>
    %196 = arith.mulf %194, %195 : vector<16x32xf32>
    %197 = vector.broadcast %172 : vector<1x32xf32> to vector<16x32xf32>
    %198 = arith.addf %196, %197 : vector<16x32xf32>
    %199 = arith.index_cast %c1_i32 : i32 to index
    %c0_57 = arith.constant 0 : index
    %c0_58 = arith.constant 0 : index
    %200 = vector.load %arg3[%199, %c0_57, %c0_58] : memref<2x32x96xf32, #tpu.memory_space<vmem>>, vector<1x32x96xf32>
    %201 = vector.shape_cast %200 : vector<1x32x96xf32> to vector<32x96xf32>
    %cst_59 = arith.constant dense<0.000000e+00> : vector<16x96xf32>
    %202 = tpu.matmul %198, %201, %cst_59 {dimension_numbers = #tpu.dot_dimension_numbers<[1], [0], [0], [1], [0, 0, 1, 1], [], []>} : vector<16x32xf32>, vector<32x96xf32>, vector<16x96xf32> -> vector<16x96xf32>
    %203 = vector.broadcast %173 : vector<1x96xf32> to vector<16x96xf32>
    %204 = arith.addf %202, %203 : vector<16x96xf32>
    %205 = vector.extract_strided_slice %204 {offsets = [0, 0], sizes = [16, 32], strides = [1, 1]} : vector<16x96xf32> to vector<16x32xf32>
    %206 = vector.extract_strided_slice %204 {offsets = [0, 32], sizes = [16, 32], strides = [1, 1]} : vector<16x96xf32> to vector<16x32xf32>
    %207 = vector.extract_strided_slice %204 {offsets = [0, 64], sizes = [16, 32], strides = [1, 1]} : vector<16x96xf32> to vector<16x32xf32>
    %208 = vector.extract_strided_slice %205 {offsets = [0, 0], sizes = [16, 8], strides = [1, 1]} : vector<16x32xf32> to vector<16x8xf32>
    %209 = vector.extract_strided_slice %206 {offsets = [0, 0], sizes = [16, 8], strides = [1, 1]} : vector<16x32xf32> to vector<16x8xf32>
    %210 = vector.extract_strided_slice %207 {offsets = [0, 0], sizes = [16, 8], strides = [1, 1]} : vector<16x32xf32> to vector<16x8xf32>
    %cst_60 = arith.constant dense<0.000000e+00> : vector<16x16xf32>
    %211 = tpu.matmul %208, %209, %cst_60 {dimension_numbers = #tpu.dot_dimension_numbers<[1], [1], [0], [0], [0, 0, 1, 0], [], []>} : vector<16x8xf32>, vector<16x8xf32>, vector<16x16xf32> -> vector<16x16xf32>
    %cst_61 = arith.constant 0.353553385 : f32
    %212 = vector.broadcast %cst_61 : f32 to vector<16x16xf32>
    %213 = arith.mulf %211, %212 : vector<16x16xf32>
    %214 = arith.addf %213, %1 : vector<16x16xf32>
    %cst_62 = arith.constant dense<0xFF800000> : vector<16xf32>
    %215 = vector.multi_reduction <maximumf>, %214, %cst_62 [1] : vector<16x16xf32> to vector<16xf32>
    %216 = vector.shape_cast %215 : vector<16xf32> to vector<16x1xf32>
    %217 = vector.broadcast %216 : vector<16x1xf32> to vector<16x16xf32>
    %218 = arith.subf %214, %217 : vector<16x16xf32>
    %219 = math.exp %218 : vector<16x16xf32>
    %cst_63 = arith.constant dense<0.000000e+00> : vector<16xf32>
    %220 = vector.multi_reduction <add>, %219, %cst_63 [1] : vector<16x16xf32> to vector<16xf32>
    %221 = vector.shape_cast %220 : vector<16xf32> to vector<16x1xf32>
    %222 = tpu.reciprocal %221 {approx = true} : vector<16x1xf32> -> vector<16x1xf32>
    %223 = vector.broadcast %222 : vector<16x1xf32> to vector<16x16xf32>
    %224 = arith.mulf %219, %223 : vector<16x16xf32>
    %cst_64 = arith.constant dense<0.000000e+00> : vector<16x8xf32>
    %225 = tpu.matmul %224, %210, %cst_64 {dimension_numbers = #tpu.dot_dimension_numbers<[1], [0], [0], [1], [0, 0, 1, 1], [], []>} : vector<16x16xf32>, vector<16x8xf32>, vector<16x8xf32> -> vector<16x8xf32>
    %226 = vector.extract_strided_slice %205 {offsets = [0, 8], sizes = [16, 8], strides = [1, 1]} : vector<16x32xf32> to vector<16x8xf32>
    %227 = vector.extract_strided_slice %206 {offsets = [0, 8], sizes = [16, 8], strides = [1, 1]} : vector<16x32xf32> to vector<16x8xf32>
    %228 = vector.extract_strided_slice %207 {offsets = [0, 8], sizes = [16, 8], strides = [1, 1]} : vector<16x32xf32> to vector<16x8xf32>
    %cst_65 = arith.constant dense<0.000000e+00> : vector<16x16xf32>
    %229 = tpu.matmul %226, %227, %cst_65 {dimension_numbers = #tpu.dot_dimension_numbers<[1], [1], [0], [0], [0, 0, 1, 0], [], []>} : vector<16x8xf32>, vector<16x8xf32>, vector<16x16xf32> -> vector<16x16xf32>
    %cst_66 = arith.constant 0.353553385 : f32
    %230 = vector.broadcast %cst_66 : f32 to vector<16x16xf32>
    %231 = arith.mulf %229, %230 : vector<16x16xf32>
    %232 = arith.addf %231, %1 : vector<16x16xf32>
    %cst_67 = arith.constant dense<0xFF800000> : vector<16xf32>
    %233 = vector.multi_reduction <maximumf>, %232, %cst_67 [1] : vector<16x16xf32> to vector<16xf32>
    %234 = vector.shape_cast %233 : vector<16xf32> to vector<16x1xf32>
    %235 = vector.broadcast %234 : vector<16x1xf32> to vector<16x16xf32>
    %236 = arith.subf %232, %235 : vector<16x16xf32>
    %237 = math.exp %236 : vector<16x16xf32>
    %cst_68 = arith.constant dense<0.000000e+00> : vector<16xf32>
    %238 = vector.multi_reduction <add>, %237, %cst_68 [1] : vector<16x16xf32> to vector<16xf32>
    %239 = vector.shape_cast %238 : vector<16xf32> to vector<16x1xf32>
    %240 = tpu.reciprocal %239 {approx = true} : vector<16x1xf32> -> vector<16x1xf32>
    %241 = vector.broadcast %240 : vector<16x1xf32> to vector<16x16xf32>
    %242 = arith.mulf %237, %241 : vector<16x16xf32>
    %cst_69 = arith.constant dense<0.000000e+00> : vector<16x8xf32>
    %243 = tpu.matmul %242, %228, %cst_69 {dimension_numbers = #tpu.dot_dimension_numbers<[1], [0], [0], [1], [0, 0, 1, 1], [], []>} : vector<16x16xf32>, vector<16x8xf32>, vector<16x8xf32> -> vector<16x8xf32>
    %244 = vector.extract_strided_slice %205 {offsets = [0, 16], sizes = [16, 8], strides = [1, 1]} : vector<16x32xf32> to vector<16x8xf32>
    %245 = vector.extract_strided_slice %206 {offsets = [0, 16], sizes = [16, 8], strides = [1, 1]} : vector<16x32xf32> to vector<16x8xf32>
    %246 = vector.extract_strided_slice %207 {offsets = [0, 16], sizes = [16, 8], strides = [1, 1]} : vector<16x32xf32> to vector<16x8xf32>
    %cst_70 = arith.constant dense<0.000000e+00> : vector<16x16xf32>
    %247 = tpu.matmul %244, %245, %cst_70 {dimension_numbers = #tpu.dot_dimension_numbers<[1], [1], [0], [0], [0, 0, 1, 0], [], []>} : vector<16x8xf32>, vector<16x8xf32>, vector<16x16xf32> -> vector<16x16xf32>
    %cst_71 = arith.constant 0.353553385 : f32
    %248 = vector.broadcast %cst_71 : f32 to vector<16x16xf32>
    %249 = arith.mulf %247, %248 : vector<16x16xf32>
    %250 = arith.addf %249, %1 : vector<16x16xf32>
    %cst_72 = arith.constant dense<0xFF800000> : vector<16xf32>
    %251 = vector.multi_reduction <maximumf>, %250, %cst_72 [1] : vector<16x16xf32> to vector<16xf32>
    %252 = vector.shape_cast %251 : vector<16xf32> to vector<16x1xf32>
    %253 = vector.broadcast %252 : vector<16x1xf32> to vector<16x16xf32>
    %254 = arith.subf %250, %253 : vector<16x16xf32>
    %255 = math.exp %254 : vector<16x16xf32>
    %cst_73 = arith.constant dense<0.000000e+00> : vector<16xf32>
    %256 = vector.multi_reduction <add>, %255, %cst_73 [1] : vector<16x16xf32> to vector<16xf32>
    %257 = vector.shape_cast %256 : vector<16xf32> to vector<16x1xf32>
    %258 = tpu.reciprocal %257 {approx = true} : vector<16x1xf32> -> vector<16x1xf32>
    %259 = vector.broadcast %258 : vector<16x1xf32> to vector<16x16xf32>
    %260 = arith.mulf %255, %259 : vector<16x16xf32>
    %cst_74 = arith.constant dense<0.000000e+00> : vector<16x8xf32>
    %261 = tpu.matmul %260, %246, %cst_74 {dimension_numbers = #tpu.dot_dimension_numbers<[1], [0], [0], [1], [0, 0, 1, 1], [], []>} : vector<16x16xf32>, vector<16x8xf32>, vector<16x8xf32> -> vector<16x8xf32>
    %262 = vector.extract_strided_slice %205 {offsets = [0, 24], sizes = [16, 8], strides = [1, 1]} : vector<16x32xf32> to vector<16x8xf32>
    %263 = vector.extract_strided_slice %206 {offsets = [0, 24], sizes = [16, 8], strides = [1, 1]} : vector<16x32xf32> to vector<16x8xf32>
    %264 = vector.extract_strided_slice %207 {offsets = [0, 24], sizes = [16, 8], strides = [1, 1]} : vector<16x32xf32> to vector<16x8xf32>
    %cst_75 = arith.constant dense<0.000000e+00> : vector<16x16xf32>
    %265 = tpu.matmul %262, %263, %cst_75 {dimension_numbers = #tpu.dot_dimension_numbers<[1], [1], [0], [0], [0, 0, 1, 0], [], []>} : vector<16x8xf32>, vector<16x8xf32>, vector<16x16xf32> -> vector<16x16xf32>
    %cst_76 = arith.constant 0.353553385 : f32
    %266 = vector.broadcast %cst_76 : f32 to vector<16x16xf32>
    %267 = arith.mulf %265, %266 : vector<16x16xf32>
    %268 = arith.addf %267, %1 : vector<16x16xf32>
    %cst_77 = arith.constant dense<0xFF800000> : vector<16xf32>
    %269 = vector.multi_reduction <maximumf>, %268, %cst_77 [1] : vector<16x16xf32> to vector<16xf32>
    %270 = vector.shape_cast %269 : vector<16xf32> to vector<16x1xf32>
    %271 = vector.broadcast %270 : vector<16x1xf32> to vector<16x16xf32>
    %272 = arith.subf %268, %271 : vector<16x16xf32>
    %273 = math.exp %272 : vector<16x16xf32>
    %cst_78 = arith.constant dense<0.000000e+00> : vector<16xf32>
    %274 = vector.multi_reduction <add>, %273, %cst_78 [1] : vector<16x16xf32> to vector<16xf32>
    %275 = vector.shape_cast %274 : vector<16xf32> to vector<16x1xf32>
    %276 = tpu.reciprocal %275 {approx = true} : vector<16x1xf32> -> vector<16x1xf32>
    %277 = vector.broadcast %276 : vector<16x1xf32> to vector<16x16xf32>
    %278 = arith.mulf %273, %277 : vector<16x16xf32>
    %cst_79 = arith.constant dense<0.000000e+00> : vector<16x8xf32>
    %279 = tpu.matmul %278, %264, %cst_79 {dimension_numbers = #tpu.dot_dimension_numbers<[1], [0], [0], [1], [0, 0, 1, 1], [], []>} : vector<16x16xf32>, vector<16x8xf32>, vector<16x8xf32> -> vector<16x8xf32>
    %280 = tpu.concatenate %225, %243, %261, %279 in 1 : vector<16x8xf32>, vector<16x8xf32>, vector<16x8xf32>, vector<16x8xf32> -> vector<16x32xf32>
    %281 = arith.index_cast %c1_i32 : i32 to index
    %c0_80 = arith.constant 0 : index
    %c0_81 = arith.constant 0 : index
    %282 = vector.load %arg4[%281, %c0_80, %c0_81] : memref<2x32x32xf32, #tpu.memory_space<vmem>>, vector<1x32x32xf32>
    %283 = vector.shape_cast %282 : vector<1x32x32xf32> to vector<32x32xf32>
    %cst_82 = arith.constant dense<0.000000e+00> : vector<16x32xf32>
    %284 = tpu.matmul %280, %283, %cst_82 {dimension_numbers = #tpu.dot_dimension_numbers<[1], [0], [0], [1], [0, 0, 1, 1], [], []>} : vector<16x32xf32>, vector<32x32xf32>, vector<16x32xf32> -> vector<16x32xf32>
    %285 = arith.addf %167, %284 : vector<16x32xf32>
    %286 = vector.broadcast %174 : vector<1x32xf32> to vector<16x32xf32>
    %287 = arith.addf %285, %286 : vector<16x32xf32>
    %cst_83 = arith.constant dense<0.000000e+00> : vector<16xf32>
    %288 = vector.multi_reduction <add>, %287, %cst_83 [1] : vector<16x32xf32> to vector<16xf32>
    %289 = vector.shape_cast %288 : vector<16xf32> to vector<16x1xf32>
    %cst_84 = arith.constant 3.200000e+01 : f32
    %290 = vector.broadcast %cst_84 : f32 to vector<16x1xf32>
    %291 = arith.divf %289, %290 : vector<16x1xf32>
    %292 = vector.broadcast %291 : vector<16x1xf32> to vector<16x32xf32>
    %293 = arith.subf %287, %292 : vector<16x32xf32>
    %294 = arith.mulf %293, %293 : vector<16x32xf32>
    %cst_85 = arith.constant dense<0.000000e+00> : vector<16xf32>
    %295 = vector.multi_reduction <add>, %294, %cst_85 [1] : vector<16x32xf32> to vector<16xf32>
    %296 = vector.shape_cast %295 : vector<16xf32> to vector<16x1xf32>
    %cst_86 = arith.constant 3.200000e+01 : f32
    %297 = vector.broadcast %cst_86 : f32 to vector<16x1xf32>
    %298 = arith.divf %296, %297 : vector<16x1xf32>
    %cst_87 = arith.constant 9.99999974E-6 : f32
    %299 = vector.broadcast %cst_87 : f32 to vector<16x1xf32>
    %300 = arith.addf %298, %299 : vector<16x1xf32>
    %301 = math.rsqrt %300 : vector<16x1xf32>
    %302 = vector.broadcast %301 : vector<16x1xf32> to vector<16x32xf32>
    %303 = arith.mulf %293, %302 : vector<16x32xf32>
    %304 = vector.broadcast %175 : vector<1x32xf32> to vector<16x32xf32>
    %305 = arith.mulf %303, %304 : vector<16x32xf32>
    %306 = vector.broadcast %176 : vector<1x32xf32> to vector<16x32xf32>
    %307 = arith.addf %305, %306 : vector<16x32xf32>
    %308 = arith.index_cast %c1_i32 : i32 to index
    %c0_88 = arith.constant 0 : index
    %c0_89 = arith.constant 0 : index
    %309 = vector.load %arg5[%308, %c0_88, %c0_89] : memref<2x32x128xf32, #tpu.memory_space<vmem>>, vector<1x32x128xf32>
    %310 = vector.shape_cast %309 : vector<1x32x128xf32> to vector<32x128xf32>
    %cst_90 = arith.constant dense<0.000000e+00> : vector<16x128xf32>
    %311 = tpu.matmul %307, %310, %cst_90 {dimension_numbers = #tpu.dot_dimension_numbers<[1], [0], [0], [1], [0, 0, 1, 1], [], []>} : vector<16x32xf32>, vector<32x128xf32>, vector<16x128xf32> -> vector<16x128xf32>
    %312 = vector.broadcast %177 : vector<1x128xf32> to vector<16x128xf32>
    %313 = arith.addf %311, %312 : vector<16x128xf32>
    %cst_91 = arith.constant 5.000000e-01 : f32
    %314 = vector.broadcast %cst_91 : f32 to vector<16x128xf32>
    %315 = arith.mulf %314, %313 : vector<16x128xf32>
    %cst_92 = arith.constant 4.471500e-02 : f32
    %316 = vector.broadcast %cst_92 : f32 to vector<16x128xf32>
    %317 = arith.mulf %316, %313 : vector<16x128xf32>
    %318 = arith.mulf %317, %313 : vector<16x128xf32>
    %319 = arith.mulf %318, %313 : vector<16x128xf32>
    %320 = arith.addf %313, %319 : vector<16x128xf32>
    %cst_93 = arith.constant 0.797884583 : f32
    %321 = vector.broadcast %cst_93 : f32 to vector<16x128xf32>
    %322 = arith.mulf %321, %320 : vector<16x128xf32>
    %323 = math.tanh %322 : vector<16x128xf32>
    %cst_94 = arith.constant 1.000000e+00 : f32
    %324 = vector.broadcast %cst_94 : f32 to vector<16x128xf32>
    %325 = arith.addf %324, %323 : vector<16x128xf32>
    %326 = arith.mulf %315, %325 : vector<16x128xf32>
    %327 = arith.index_cast %c1_i32 : i32 to index
    %c0_95 = arith.constant 0 : index
    %c0_96 = arith.constant 0 : index
    %328 = vector.load %arg6[%327, %c0_95, %c0_96] : memref<2x128x32xf32, #tpu.memory_space<vmem>>, vector<1x128x32xf32>
    %329 = vector.shape_cast %328 : vector<1x128x32xf32> to vector<128x32xf32>
    %cst_97 = arith.constant dense<0.000000e+00> : vector<16x32xf32>
    %330 = tpu.matmul %326, %329, %cst_97 {dimension_numbers = #tpu.dot_dimension_numbers<[1], [0], [0], [1], [0, 0, 1, 1], [], []>} : vector<16x128xf32>, vector<128x32xf32>, vector<16x32xf32> -> vector<16x32xf32>
    %331 = arith.addf %287, %330 : vector<16x32xf32>
    %332 = vector.broadcast %178 : vector<1x32xf32> to vector<16x32xf32>
    %333 = arith.addf %331, %332 : vector<16x32xf32>
    %c2_i32 = arith.constant 2 : i32
    %c0_98 = arith.constant 0 : index
    %c0_99 = arith.constant 0 : index
    %334 = vector.load %arg7[%c0_98, %c0_99] : memref<2x32xf32, #tpu.memory_space<vmem>>, vector<2x32xf32>
    %335 = vector.extract_strided_slice %334 {offsets = [0, 0], sizes = [1, 32], strides = [1, 1]} : vector<2x32xf32> to vector<1x32xf32>
    %336 = vector.extract_strided_slice %334 {offsets = [1, 0], sizes = [1, 32], strides = [1, 1]} : vector<2x32xf32> to vector<1x32xf32>
    %cst_100 = arith.constant dense<0.000000e+00> : vector<16xf32>
    %337 = vector.multi_reduction <add>, %333, %cst_100 [1] : vector<16x32xf32> to vector<16xf32>
    %338 = vector.shape_cast %337 : vector<16xf32> to vector<16x1xf32>
    %cst_101 = arith.constant 3.200000e+01 : f32
    %339 = vector.broadcast %cst_101 : f32 to vector<16x1xf32>
    %340 = arith.divf %338, %339 : vector<16x1xf32>
    %341 = vector.broadcast %340 : vector<16x1xf32> to vector<16x32xf32>
    %342 = arith.subf %333, %341 : vector<16x32xf32>
    %343 = arith.mulf %342, %342 : vector<16x32xf32>
    %cst_102 = arith.constant dense<0.000000e+00> : vector<16xf32>
    %344 = vector.multi_reduction <add>, %343, %cst_102 [1] : vector<16x32xf32> to vector<16xf32>
    %345 = vector.shape_cast %344 : vector<16xf32> to vector<16x1xf32>
    %cst_103 = arith.constant 3.200000e+01 : f32
    %346 = vector.broadcast %cst_103 : f32 to vector<16x1xf32>
    %347 = arith.divf %345, %346 : vector<16x1xf32>
    %cst_104 = arith.constant 9.99999974E-6 : f32
    %348 = vector.broadcast %cst_104 : f32 to vector<16x1xf32>
    %349 = arith.addf %347, %348 : vector<16x1xf32>
    %350 = math.rsqrt %349 : vector<16x1xf32>
    %351 = vector.broadcast %350 : vector<16x1xf32> to vector<16x32xf32>
    %352 = arith.mulf %342, %351 : vector<16x32xf32>
    %353 = vector.broadcast %335 : vector<1x32xf32> to vector<16x32xf32>
    %354 = arith.mulf %352, %353 : vector<16x32xf32>
    %355 = vector.broadcast %336 : vector<1x32xf32> to vector<16x32xf32>
    %356 = arith.addf %354, %355 : vector<16x32xf32>
    %c0_105 = arith.constant 0 : index
    %c0_106 = arith.constant 0 : index
    %357 = vector.load %arg8[%c0_105, %c0_106] : memref<256x32xf32, #tpu.memory_space<vmem>>, vector<256x32xf32>
    %cst_107 = arith.constant dense<0.000000e+00> : vector<16x256xf32>
    %358 = tpu.matmul %356, %357, %cst_107 {dimension_numbers = #tpu.dot_dimension_numbers<[1], [1], [0], [0], [0, 0, 1, 0], [], []>} : vector<16x32xf32>, vector<256x32xf32>, vector<16x256xf32> -> vector<16x256xf32>
    %c0_108 = arith.constant 0 : index
    %c0_109 = arith.constant 0 : index
    %359 = vector.load %arg9[%c0_108, %c0_109] : memref<16x256xf32, #tpu.memory_space<vmem>>, vector<16x256xf32>
    tpu.vector_store %arg9[%c0_108, %c0_109], %358 {strides = array<i32>} : memref<16x256xf32, #tpu.memory_space<vmem>>, vector<16x256xf32>,
    return
  }
}

</mosaic_0001>

<bundles_post_ra>
// kernel: gpt_forward.1
= control target key start
LH: loop header
LB: loop body
LE: loop exit
PB: predicated region body
PF: predicated region fallthrough
CT: control target
= control target key end

     0   :  { %vm38_vm0 = vcmask 261120   ;;  %s2750_s0 = inlined_call_operand.vmem [shape: f32[16,32], index: 0, kind: input, shape index: {}]   ;;  %s2751_s1 = inlined_call_operand.vmem [shape: f32[16,16], index: 1, kind: input, shape index: {}]   ;;  %s2752_s2 = inlined_call_operand.vmem [shape: f32[2,8,128], index: 2, kind: input, shape index: {}]   ;;  %s2753_s3 = inlined_call_operand.vmem [shape: f32[2,32,96], index: 3, kind: input, shape index: {}]   ;;  %s2754_s4 = inlined_call_operand.vmem [shape: f32[2,32,32], index: 4, kind: input, shape index: {}]   ;;  %s2755_s5 = inlined_call_operand.vmem [shape: f32[2,32,128], index: 5, kind: input, shape index: {}]   ;;  %s2756_s6 = inlined_call_operand.vmem [shape: f32[2,128,32], index: 6, kind: input, shape index: {}]   ;;  %s2757_s7 = inlined_call_operand.vmem [shape: f32[2,32], index: 7, kind: input, shape index: {}]   ;;  %s2758_s8 = inlined_call_operand.vmem [shape: f32[256,32], index: 8, kind: input, shape index: {}]   ;;  %s2759_s9 = inlined_call_operand.hbm [shape: f32[16,256], index: 9, kind: output, shape index: {}]  }
   0x1   :  { %v2078_v0 = vld [vmem:[%s2750_s0] sm:$0xff] }
   0x2   :  { %14 = vsyncpa [#allocation3], 0  ;;  %v39_v1 = vsel %vm38_vm0, %v2078_v0, 0.0  ;;  %v2085_v2 = vld [vmem:[%s2750_s0 + $0x8] sm:$0xff]  ;;  %v2008_v4 = vmov 32.0   ;;  %v99_v21 = vld [vmem:[%s2753_s3 + $0x18] sm:$0xff] }
   0x3   :  { %40 = vadd.xlane.f32.xlu0 %v39_v1  ;;  %v42_v3 = vsel %vm38_vm0, %v2085_v2, 0.0  ;;  %1886 = vrcp.f32 %v2008_v4  ;;  %119 = vmatpush.msra.mxu3 %v99_v21  ;;  %v98_v22 = vld [vmem:[%s2753_s3 + $0x10] sm:$0xff]  ;;  %v97_v23 = vld [vmem:[%s2753_s3 + $0x8] sm:$0xff]  ;;  %v96_v24 = vld [vmem:[%s2753_s3] sm:$0xff]  ;;  %s2009_s22 = smov 88   ;;  %s2010_s23 = smov 96  }
   0x4   :  { %v2114_v36 = vld [vmem:[%s2752_s2] sm:$0xff]  ;;  %s2011_s24 = smov 120   ;;  %vm136_vm8 = vcmask 64512   ;;  %vm172_vm9 = vcmask 130048   ;;  %s2012_s29 = smov 64   ;;  %vm558_vm10 = vcmask 195584  }
   0x5   :  { %120 = vmatpush.msra.mxu3 %v98_v22  ;;  %v90_v40 = vperm.slane %v2114_v36, 0  ;;  %v93_v44 = vperm.slane %v2114_v36, 1  ;;  %v100_v54 = vperm.slane %v2114_v36, 2  ;;  %v2150_v4 = vld [vmem:[%s2751_s1] sm:$0xff]  ;;  %s2013_s30 = smov 80   ;;  %s2014_s10 = smov 112  }
   0x6   :  { %s2015_s11 = smov 56   ;;  %s2016_s12 = smov 48  }
   0x7   :  { %121 = vmatpush.msra.mxu3 %v97_v23  ;;  %s2017_s0 = smov 72   ;;  %s2018_s13 = smov 104  }
   0x8   :  { %s2019_s14 = smov 8   ;;  %s2020_s15 = smov 40  }
   0x9   :  { %v1887_v5 = vpop.eup %1886  ;;  %122 = vmatpush.msra.mxu3 %v96_v24  ;;  %s2760_s16 = smov 16   ;;  %s2762_s26 = smov 24  }
   0xa   :  { %v46_v6 = vmul.f32 32.0, %v1887_v5  ;;  %vm50_vm1 = vweird.f32 %v1887_v5  ;;  %s2024_s21 = smov 256  }
   0xb   :  { %43 = vadd.xlane.f32.xlu0 %v42_v3 }
   0xc   :  { %v47_v7 = vsub.f32 1.0, %v46_v6 }
   0xe   :  { %v48_v8 = vmul.f32 %v1887_v5, %v47_v7 }
  0x10   :  { %v49_v9 = vadd.f32 %v1887_v5, %v48_v8 }
  0x12   :  { %v2089_v10 = vsel %vm50_vm1, %v1887_v5, %v49_v9  ;;  %v2157_v9 = vld [vmem:[%s2751_s1 + $0x8] sm:$0xff] }
  0x76   :  { %v41_v11 = vpop.xlane.xlu0 %40 }
  0x77   :  { %v52_v12 = vmul.f32 %v2089_v10, %v41_v11 }
  0x79   :  { %v54_v13 = vsub.f32 %v2078_v0, %v52_v12 }
  0x7b   :  { %v56_v14 = vmul.f32 %v54_v13, %v54_v13 }
  0x7d   :  { %v58_v15 = vsel %vm38_vm0, %v56_v14, 0.0 }
  0x7e   :  { %59 = vadd.xlane.f32.xlu1 %v58_v15  ;;  %v44_v16 = vpop.xlane.xlu0 %43 }
  0x7f   :  { %v53_v17 = vmul.f32 %v2089_v10, %v44_v16 }
  0x81   :  { %v55_v18 = vsub.f32 %v2085_v2, %v53_v17 }
  0x83   :  { %v57_v19 = vmul.f32 %v55_v18, %v55_v18 }
  0x85   :  { %v61_v20 = vsel %vm38_vm0, %v57_v19, 0.0 }
  0x86   :  { %62 = vadd.xlane.f32.xlu1 %v61_v20 }
  0xf1   :  { %v60_v25 = vpop.xlane.xlu1 %59 }
  0xf2   :  { %v64_v26 = vmul.f32 %v60_v25, %v2089_v10 }
  0xf4   :  { %v66_v27 = vadd.f32 1e-05, %v64_v26 }
  0xf6   :  { %1888 = vrsqrt.f32 %v66_v27  ;;  %vm74_vm3 = vweird.f32 %v66_v27 }
  0xf9   :  { %v63_v28 = vpop.xlane.xlu1 %62 }
  0xfa   :  { %v65_v29 = vmul.f32 %v63_v28, %v2089_v10 }
  0xfc   :  { %v1889_v30 = vpop.eup %1888  ;;  %v67_v31 = vadd.f32 1e-05, %v65_v29 }
  0xfd   :  { %v69_v32 = vmul.f32 %v1889_v30, %v66_v27  ;;  %vm75_vm2 = vweird.f32 %v1889_v30 }
  0xfe   :  { %1890 = vrsqrt.f32 %v67_v31  ;;  %vm76_vm4 = vmor %vm74_vm3, %vm75_vm2  ;;  %vm84_vm6 = vweird.f32 %v67_v31 }
  0xff   :  { %v70_v33 = vmul.f32 %v1889_v30, %v69_v32 }
 0x101   :  { %v71_v34 = vmul.f32 0.5, %v70_v33 }
 0x103   :  { %v72_v35 = vsub.f32 1.5, %v71_v34 }
 0x104   :  { %v1891_v37 = vpop.eup %1890 }
 0x105   :  { %v73_v38 = vmul.f32 %v1889_v30, %v72_v35  ;;  %v79_v39 = vmul.f32 %v1891_v37, %v67_v31  ;;  %vm85_vm5 = vweird.f32 %v1891_v37 }
 0x106   :  { %vm86_vm7 = vmor %vm84_vm6, %vm85_vm5 }
 0x107   :  { %v77_v41 = vsel %vm76_vm4, %v1889_v30, %v73_v38  ;;  %v80_v42 = vmul.f32 %v1891_v37, %v79_v39 }
 0x108   :  { %v88_v43 = vmul.f32 %v77_v41, %v54_v13 }
 0x109   :  { %v81_v45 = vmul.f32 0.5, %v80_v42 }
 0x10a   :  { %v91_v46 = vmul.f32 %v90_v40, %v88_v43 }
 0x10b   :  { %v82_v47 = vsub.f32 1.5, %v81_v45 }
 0x10c   :  { %v94_v48 = vadd.f32 %v93_v44, %v91_v46 }
 0x10d   :  { %v83_v49 = vmul.f32 %v1891_v37, %v82_v47 }
 0x10e   :  { %1700 = vmatmul.msk.f32.vlgmr.msra.gmra.mxu3 %vm38_vm0, %v94_v48 }
 0x10f   :  { %v87_v50 = vsel %vm86_vm7, %v1891_v37, %v83_v49 }
 0x110   :  { %v89_v51 = vmul.f32 %v87_v50, %v55_v18 }
 0x112   :  { %v92_v52 = vmul.f32 %v90_v40, %v89_v51 }
 0x114   :  { %v95_v53 = vadd.f32 %v93_v44, %v92_v52 }
 0x116   :  { %1701 = vmatmul.msk.f32.gmra.mxu3 %vm38_vm0, %v95_v53 }
 0x191   :  { %v124_v55 = vpop.f32.mrf.mxu3 }
 0x192   :  { %v2121_v56 = vadd.f32 %v124_v55, %v100_v54 }
 0x194   :  { %234 = vrot.lane.b32.xlu1 %v2121_v56, %s2009_s22 }
 0x199   :  { %v127_v57 = vpop.f32.mrf.mxu3 }
 0x19a   :  { %v2125_v58 = vadd.f32 %v127_v57, %v100_v54 }
 0x19c   :  { %236 = vrot.lane.b32.xlu0 %v2125_v58, %s2009_s22  ;;  %134 = vrot.lane.b32.xlu2 %v2125_v58, %s2010_s23  ;;  %v2167_v22 = vpack.i.bf16 %v2121_v56, %v2125_v58 }
 0x1a4   :  { %132 = vrot.lane.b32.xlu2 %v2121_v56, %s2010_s23 }
 0x1ac   :  { %230 = vrot.lane.b32.xlu2 %v2121_v56, %s2011_s24 }
 0x1b4   :  { %232 = vrot.lane.b32.xlu2 %v2125_v58, %s2011_s24 }
 0x1f6   :  { %v135_v59 = vpop.permute.xlu2 %134 }
 0x1f7   :  { %1702 = vmatpush.xpose.msk.msrb.mxu3 %vm136_vm8, %v135_v59 }
 0x1fe   :  { %v133_v60 = vpop.permute.xlu2 %132 }
 0x1ff   :  { %1703 = vmatpush.xpose.msk.msrb.mxu3 %vm136_vm8, %v133_v60 }
 0x202   :  { %1704 = vmatmul.msk.f32.vlgmr.msrb.gmra.mxu3 %vm136_vm8, %v2121_v56 }
 0x206   :  { %v235_v62 = vpop.permute.xlu1 %234  ;;  %v231_v63 = vpop.permute.xlu2 %230 }
 0x20a   :  { %1705 = vmatmul.msk.f32.gmra.mxu3 %vm136_vm8, %v2125_v58 }
 0x20e   :  { %v237_v61 = vpop.permute.xlu0 %236  ;;  %v233_v1 = vpop.permute.xlu2 %232 }
 0x20f   :  { %1708 = vmatpush.xpose.msk.msra.mxu3 %vm136_vm8, %v237_v61 }
 0x213   :  { %1709 = vmatpush.xpose.msk.msra.mxu3 %vm136_vm8, %v235_v62 }
 0x216   :  { %1710 = vmatmul.msk.f32.vlgmr.msra.gmra.mxu3 %vm136_vm8, %v231_v63 }
 0x21e   :  { %1711 = vmatmul.msk.f32.gmra.mxu3 %vm136_vm8, %v233_v1 }
 0x285   :  { %v162_v3 = vpop.f32.mrf.mxu3 }
 0x286   :  { %v168_v5 = vmul.f32 0.35355338, %v162_v3 }
 0x288   :  { %v170_v6 = vadd.f32 %v168_v5, %v2150_v4 }
 0x28a   :  { %v173_v7 = vsel %vm172_vm9, %v170_v6, -inf }
 0x28b   :  { %174 = vmax.xlane.f32.xlu2 %v173_v7 }
 0x28d   :  { %v165_v8 = vpop.f32.mrf.mxu3 }
 0x28e   :  { %v169_v11 = vmul.f32 0.35355338, %v165_v8 }
 0x290   :  { %v171_v12 = vadd.f32 %v169_v11, %v2157_v9 }
 0x292   :  { %v176_v13 = vsel %vm172_vm9, %v171_v12, -inf }
 0x293   :  { %177 = vmax.xlane.f32.xlu0 %v176_v13 }
 0x299   :  { %v263_v14 = vpop.f32.mrf.mxu3 }
 0x29a   :  { %v269_v15 = vmul.f32 0.35355338, %v263_v14 }
 0x29c   :  { %v271_v16 = vadd.f32 %v269_v15, %v2150_v4 }
 0x29e   :  { %v273_v17 = vsel %vm172_vm9, %v271_v16, -inf }
 0x29f   :  { %274 = vmax.xlane.f32.xlu1 %v273_v17 }
 0x2a1   :  { %v266_v18 = vpop.f32.mrf.mxu3 }
 0x2a2   :  { %v270_v19 = vmul.f32 0.35355338, %v266_v18 }
 0x2a4   :  { %v272_v20 = vadd.f32 %v270_v19, %v2157_v9 }
 0x2a6   :  { %v276_v21 = vsel %vm172_vm9, %v272_v20, -inf }
 0x2a7   :  { %277 = vmax.xlane.f32.xlu2 %v276_v21 }
 0x2bf   :  { %1847 = vrot.lane.b32.xlu2 %v2167_v22, %s2012_s29 }
 0x2c7   :  { %334 = vrot.lane.b32.xlu2 %v2121_v56, %s2013_s30 }
 0x2cf   :  { %332 = vrot.lane.b32.xlu2 %v2125_v58, %s2014_s10 }
 0x2fe   :  { %v175_v23 = vpop.xlane.xlu2 %174 }
 0x2ff   :  { %v179_v24 = vsub.f32 %v170_v6, %v175_v23 }
 0x301   :  { %v181_v25 = vmul.f32 1.442695, %v179_v24 }
 0x303   :  { %1892 = vpow2.f32 %v181_v25 }
 0x306   :  { %v178_v26 = vpop.xlane.xlu0 %177 }
 0x307   :  { %v180_v27 = vsub.f32 %v171_v12, %v178_v26 }
 0x309   :  { %v1893_v28 = vpop.eup %1892  ;;  %v183_v29 = vmul.f32 1.442695, %v180_v27 }
 0x30a   :  { %v185_v30 = vsel %vm172_vm9, %v1893_v28, 0.0 }
 0x30b   :  { %1894 = vpow2.f32 %v183_v29  ;;  %186 = vadd.xlane.f32.xlu0 %v185_v30 }
 0x311   :  { %v1895_v31 = vpop.eup %1894 }
 0x312   :  { %v275_v32 = vpop.xlane.xlu1 %274  ;;  %v188_v33 = vsel %vm172_vm9, %v1895_v31, 0.0 }
 0x313   :  { %v279_v34 = vsub.f32 %v271_v16, %v275_v32  ;;  %189 = vadd.xlane.f32.xlu1 %v188_v33 }
 0x315   :  { %v281_v35 = vmul.f32 1.442695, %v279_v34 }
 0x317   :  { %1896 = vpow2.f32 %v281_v35 }
 0x31a   :  { %v278_v37 = vpop.xlane.xlu2 %277 }
 0x31b   :  { %v280_v38 = vsub.f32 %v272_v20, %v278_v37 }
 0x31d   :  { %v1897_v39 = vpop.eup %1896  ;;  %v283_v40 = vmul.f32 1.442695, %v280_v38 }
 0x31e   :  { %v285_v41 = vsel %vm172_vm9, %v1897_v39, 0.0 }
 0x31f   :  { %1898 = vpow2.f32 %v283_v40  ;;  %286 = vadd.xlane.f32.xlu0 %v285_v41 }
 0x322   :  { %v1848_v42 = vpop.permute.xlu2 %1847 }
 0x323   :  { %v1849_v43 = vunpack.i.l.bf16 %v1848_v42  ;;  %v1850_v45 = vunpack.i.h.bf16 %v1848_v42 }
 0x325   :  { %v1899_v44 = vpop.eup %1898  ;;  %221 = vmatpush.msra.mxu2 %v1849_v43 }
 0x326   :  { %v288_v46 = vsel %vm172_vm9, %v1899_v44, 0.0 }
 0x327   :  { %289 = vadd.xlane.f32.xlu0 %v288_v46  ;;  %222 = vmatpush.msra.mxu2 %v1850_v45 }
 0x32a   :  { %v335_v62 = vpop.permute.xlu2 %334 }
 0x32c   :  { %1852 = vrot.lane.b32.xlu1 %v2167_v22, %s2015_s11 }
 0x332   :  { %v333_v3 = vpop.permute.xlu2 %332 }
 0x33b   :  { %336 = vrot.lane.b32.xlu0 %v2125_v58, %s2013_s30 }
 0x343   :  { %1857 = vrot.lane.b32.xlu0 %v2167_v22, %s2016_s12 }
 0x34b   :  { %436 = vrot.lane.b32.xlu0 %v2125_v58, %s2017_s0 }
 0x353   :  { %434 = vrot.lane.b32.xlu0 %v2121_v56, %s2017_s0 }
 0x35b   :  { %430 = vrot.lane.b32.xlu0 %v2121_v56, %s2018_s13 }
 0x363   :  { %432 = vrot.lane.b32.xlu0 %v2125_v58, %s2018_s13 }
 0x37e   :  { %v187_v47 = vpop.xlane.xlu0 %186 }
 0x37f   :  { %1900 = vrcp.f32 %v187_v47 }
 0x385   :  { %v1901_v48 = vpop.eup %1900 }
 0x386   :  { %v190_v49 = vpop.xlane.xlu1 %189  ;;  %v193_v50 = vmul.f32 %v1901_v48, %v1893_v28 }
 0x387   :  { %1902 = vrcp.f32 %v190_v49 }
 0x388   :  { %1706 = vmatmul.msk.f32.vlgmr.msra.gmra.mxu2 %vm172_vm9, %v193_v50 }
 0x38d   :  { %v1903_v51 = vpop.eup %1902 }
 0x38e   :  { %v194_v52 = vmul.f32 %v1903_v51, %v1895_v31 }
 0x390   :  { %1707 = vmatmul.msk.f32.gmra.mxu2 %vm172_vm9, %v194_v52 }
 0x392   :  { %v287_v53 = vpop.xlane.xlu0 %286 }
 0x393   :  { %1904 = vrcp.f32 %v287_v53 }
 0x399   :  { %v1905_v57 = vpop.eup %1904 }
 0x39a   :  { %v290_v54 = vpop.xlane.xlu0 %289  ;;  %v293_v60 = vmul.f32 %v1905_v57, %v1897_v39 }
 0x39b   :  { %1906 = vrcp.f32 %v290_v54 }
 0x39e   :  { %v1853_v55 = vpop.permute.xlu1 %1852 }
 0x39f   :  { %v1854_v59 = vunpack.i.l.bf16 %v1853_v55  ;;  %v1855_v58 = vunpack.i.h.bf16 %v1853_v55 }
 0x3a1   :  { %321 = vmatpush.msrb.mxu2 %v1854_v59  ;;  %v1907_v61 = vpop.eup %1906 }
 0x3a2   :  { %v294_v63 = vmul.f32 %v1907_v61, %v1899_v44 }
 0x3a3   :  { %322 = vmatpush.msrb.mxu2 %v1855_v58 }
 0x3a4   :  { %1712 = vmatmul.msk.f32.vlgmr.msrb.gmra.mxu2 %vm172_vm9, %v293_v60 }
 0x3ac   :  { %1713 = vmatmul.msk.f32.gmra.mxu2 %vm172_vm9, %v294_v63 }
 0x3ad   :  { %v337_v1 = vpop.permute.xlu0 %336 }
 0x3ae   :  { %1714 = vmatpush.xpose.msk.msra.mxu0 %vm136_vm8, %v337_v1  ;;  %1825 = vmatpush.xpose.msk.msra.mxu2 %vm136_vm8, %v337_v1 }
 0x3b2   :  { %1715 = vmatpush.xpose.msk.msra.mxu0 %vm136_vm8, %v335_v62  ;;  %1826 = vmatpush.xpose.msk.msra.mxu2 %vm136_vm8, %v335_v62 }
 0x3b5   :  { %v1858_v5 = vpop.permute.xlu0 %1857  ;;  %1717 = vmatmul.msk.f32.vlgmr.msra.gmra.mxu2 %vm136_vm8, %v333_v3 }
 0x3b6   :  { %v1859_v6 = vunpack.i.l.bf16 %v1858_v5  ;;  %v1860_v7 = vunpack.i.h.bf16 %v1858_v5 }
 0x3b8   :  { %421 = vmatpush.msra.mxu1 %v1859_v6  ;;  %1827 = vmatpush.msrb.mxu3 %v1859_v6 }
 0x3ba   :  { %422 = vmatpush.msra.mxu1 %v1860_v7  ;;  %1828 = vmatpush.msrb.mxu3 %v1860_v7 }
 0x3bd   :  { %v437_v8 = vpop.permute.xlu0 %436 }
 0x3be   :  { %1720 = vmatpush.xpose.msk.msra.mxu3 %vm136_vm8, %v437_v8 }
 0x3c5   :  { %v435_v11 = vpop.permute.xlu0 %434 }
 0x3c6   :  { %1721 = vmatpush.xpose.msk.msra.mxu3 %vm136_vm8, %v435_v11 }
 0x3cd   :  { %v431_v30 = vpop.permute.xlu0 %430 }
 0x3d5   :  { %v433_v32 = vpop.permute.xlu0 %432 }
 0x40b   :  { %v2204_v12 = vpop.f32.mrf.mxu2 }
 0x413   :  { %v2206_v13 = vpop.f32.mrf.mxu2 }
 0x427   :  { %v2208_v14 = vpop.f32.mrf.mxu2 }
 0x42f   :  { %v327_v15 = vpop.f32.mrf.mxu2 }
 0x438   :  { %v366_v16 = vpop.f32.mrf.mxu2 }
 0x439   :  { %v370_v17 = vmul.f32 0.35355338, %v366_v16 }
 0x43b   :  { %v372_v18 = vadd.f32 %v370_v17, %v2157_v9  ;;  %v563_v17 = vld [vmem:[%s2754_s4 + $0x10] sm:$0xff] }
 0x43d   :  { %v376_v19 = vsel %vm172_vm9, %v372_v18, -inf }
 0x43e   :  { %377 = vmax.xlane.f32.xlu1 %v376_v19 }
 0x457   :  { %330 = vrot.lane.b32.xlu1 %v2121_v56, %s2014_s10 }
 0x4b1   :  { %v378_v20 = vpop.xlane.xlu1 %377 }
 0x4b2   :  { %v380_v21 = vsub.f32 %v372_v18, %v378_v20  ;;  %v562_v18 = vld [vmem:[%s2754_s4 + $0x8] sm:$0xff] }
 0x4b4   :  { %v383_v23 = vmul.f32 1.442695, %v380_v21  ;;  %v561_v21 = vld [vmem:[%s2754_s4] sm:$0xff] }
 0x4b6   :  { %1908 = vpow2.f32 %v383_v23 }
 0x4bc   :  { %v1909_v24 = vpop.eup %1908 }
 0x4bd   :  { %v388_v25 = vsel %vm172_vm9, %v1909_v24, 0.0 }
 0x4be   :  { %389 = vadd.xlane.f32.xlu2 %v388_v25 }
 0x4c9   :  { %v331_v26 = vpop.permute.xlu1 %330 }
 0x4ca   :  { %1716 = vmatmul.msk.f32.vlgmr.msra.gmra.mxu0 %vm136_vm8, %v331_v26 }
 0x531   :  { %v390_v27 = vpop.xlane.xlu2 %389 }
 0x532   :  { %1910 = vrcp.f32 %v390_v27 }
 0x538   :  { %v1911_v28 = vpop.eup %1910 }
 0x539   :  { %v394_v29 = vmul.f32 %v1911_v28, %v1909_v24 }
 0x53b   :  { %1719 = vmatmul.msk.f32.vlgmr.msrb.gmra.mxu3 %vm172_vm9, %v394_v29 }
 0x543   :  { %1722 = vmatmul.msk.f32.vlgmr.msra.gmra.mxu3 %vm136_vm8, %v431_v30 }
 0x547   :  { %v363_v56 = vpop.f32.mrf.mxu0 }
 0x548   :  { %v369_v31 = vmul.f32 0.35355338, %v363_v56 }
 0x54a   :  { %v371_v33 = vadd.f32 %v369_v31, %v2150_v4 }
 0x54b   :  { %1723 = vmatmul.msk.f32.gmra.mxu3 %vm136_vm8, %v433_v32 }
 0x54c   :  { %v373_v34 = vsel %vm172_vm9, %v371_v33, -inf }
 0x54d   :  { %374 = vmax.xlane.f32.xlu2 %v373_v34 }
 0x5be   :  { %v2221_v35 = vpop.f32.mrf.mxu3 }
 0x5c0   :  { %v375_v37 = vpop.xlane.xlu2 %374 }
 0x5c1   :  { %v379_v38 = vsub.f32 %v371_v33, %v375_v37 }
 0x5c3   :  { %v381_v39 = vmul.f32 1.442695, %v379_v38 }
 0x5c5   :  { %1912 = vpow2.f32 %v381_v39 }
 0x5c6   :  { %v463_v40 = vpop.f32.mrf.mxu3 }
 0x5c7   :  { %v469_v41 = vmul.f32 0.35355338, %v463_v40 }
 0x5c9   :  { %v471_v42 = vadd.f32 %v469_v41, %v2150_v4 }
 0x5cb   :  { %v1913_v43 = vpop.eup %1912  ;;  %v473_v44 = vsel %vm172_vm9, %v471_v42, -inf }
 0x5cc   :  { %474 = vmax.xlane.f32.xlu0 %v473_v44  ;;  %v385_v45 = vsel %vm172_vm9, %v1913_v43, 0.0 }
 0x5cd   :  { %386 = vadd.xlane.f32.xlu1 %v385_v45 }
 0x5ce   :  { %v466_v46 = vpop.f32.mrf.mxu3 }
 0x5cf   :  { %v470_v47 = vmul.f32 0.35355338, %v466_v46 }
 0x5d1   :  { %v472_v48 = vadd.f32 %v470_v47, %v2157_v9 }
 0x5d3   :  { %v476_v49 = vsel %vm172_vm9, %v472_v48, -inf }
 0x5d4   :  { %477 = vmax.xlane.f32.xlu2 %v476_v49 }
 0x5e6   :  { %534 = vrot.lane.b32.xlu1 %v327_v15, %s2019_s14 }
 0x63f   :  { %v475_v50 = vpop.xlane.xlu0 %474 }
 0x640   :  { %v479_v51 = vsub.f32 %v471_v42, %v475_v50  ;;  %v387_v52 = vpop.xlane.xlu1 %386  ;;  %v652_v50 = vld [vmem:[%s2755_s5 + $0x18] sm:$0xff] }
 0x641   :  { %1914 = vrcp.f32 %v387_v52  ;;  %672 = vmatpush.msrb.mxu1 %v652_v50  ;;  %v650_v52 = vld [vmem:[%s2755_s5 + $0x8] sm:$0xff] }
 0x642   :  { %v481_v53 = vmul.f32 1.442695, %v479_v51  ;;  %v651_v51 = vld [vmem:[%s2755_s5 + $0x10] sm:$0xff] }
 0x643   :  { %673 = vmatpush.msrb.mxu1 %v651_v51 }
 0x644   :  { %1916 = vpow2.f32 %v481_v53  ;;  %v649_v53 = vld [vmem:[%s2755_s5] sm:$0xff] }
 0x645   :  { %674 = vmatpush.msrb.mxu1 %v650_v52 }
 0x647   :  { %v1915_v54 = vpop.eup %1914  ;;  %v478_v55 = vpop.xlane.xlu2 %477  ;;  %675 = vmatpush.msrb.mxu1 %v649_v53 }
 0x648   :  { %v480_v57 = vsub.f32 %v472_v48, %v478_v55  ;;  %v393_v59 = vmul.f32 %v1915_v54, %v1913_v43 }
 0x64a   :  { %v1917_v58 = vpop.eup %1916  ;;  %v483_v60 = vmul.f32 1.442695, %v480_v57  ;;  %1718 = vmatmul.msk.f32.vlgmr.msra.gmra.mxu1 %vm172_vm9, %v393_v59 }
 0x64b   :  { %v485_v61 = vsel %vm172_vm9, %v1917_v58, 0.0 }
 0x64c   :  { %1918 = vpow2.f32 %v483_v60  ;;  %486 = vadd.xlane.f32.xlu2 %v485_v61 }
 0x652   :  { %v1919_v62 = vpop.eup %1918 }
 0x653   :  { %v488_v63 = vsel %vm172_vm9, %v1919_v62, 0.0 }
 0x654   :  { %489 = vadd.xlane.f32.xlu0 %v488_v63 }
 0x658   :  { %v535_v29 = vpop.permute.xlu1 %534 }
 0x659   :  { %v555_v56 = vsel %vm136_vm8, %v2206_v13, %v535_v29 }
 0x664   :  { %1862 = vrot.lane.b32.xlu2 %v2167_v22, %s2020_s15 }
 0x66c   :  { %532 = vrot.lane.b32.xlu2 %v2208_v14, %s2019_s14  ;;  %v564_v14 = vld [vmem:[%s2754_s4 + $0x18] sm:$0xff] }
 0x66d   :  { %583 = vmatpush.msrb.mxu0 %v564_v14 }
 0x66f   :  { %584 = vmatpush.msrb.mxu0 %v563_v17  ;;  %v713_v17 = vld [vmem:[%s2756_s6 + $0x60] sm:$0xff] }
 0x671   :  { %585 = vmatpush.msrb.mxu0 %v562_v18 }
 0x673   :  { %586 = vmatpush.msrb.mxu0 %v561_v21 }
 0x6bf   :  { %v487_v1 = vpop.xlane.xlu2 %486 }
 0x6c0   :  { %1920 = vrcp.f32 %v487_v1  ;;  %v643_v1 = vperm.slane %v2114_v36, 4 }
 0x6c6   :  { %v1921_v7 = vpop.eup %1920 }
 0x6c7   :  { %v424_v3 = vpop.f32.mrf.mxu1  ;;  %v490_v5 = vpop.xlane.xlu0 %489  ;;  %v493_v15 = vmul.f32 %v1921_v7, %v1917_v58 }
 0x6c8   :  { %v1863_v6 = vpop.permute.xlu2 %1862  ;;  %540 = vrot.lane.b32.xlu0 %v424_v3, %s2760_s16  ;;  %1922 = vrcp.f32 %v490_v5 }
 0x6c9   :  { %v1864_v8 = vunpack.i.l.bf16 %v1863_v6  ;;  %v1865_v11 = vunpack.i.h.bf16 %v1863_v6  ;;  %v646_v6 = vperm.slane %v2114_v36, 5 }
 0x6cb   :  { %521 = vmatpush.msrb.mxu2 %v1864_v8 }
 0x6cd   :  { %522 = vmatpush.msrb.mxu2 %v1865_v11  ;;  %v716_v11 = vld [vmem:[%s2756_s6 + $0x78] sm:$0xff] }
 0x6ce   :  { %1724 = vmatmul.msk.f32.vlgmr.msrb.gmra.mxu2 %vm172_vm9, %v493_v15  ;;  %v1923_v22 = vpop.eup %1922  ;;  %v715_v15 = vld [vmem:[%s2756_s6 + $0x70] sm:$0xff]  ;;  %717 = vmatpush.msrb.mxu3 %v716_v11 }
 0x6cf   :  { %v494_v16 = vmul.f32 %v1923_v22, %v1919_v62  ;;  %v714_v22 = vld [vmem:[%s2756_s6 + $0x68] sm:$0xff] }
 0x6d0   :  { %v533_v23 = vpop.permute.xlu2 %532  ;;  %718 = vmatpush.msrb.mxu3 %v715_v15 }
 0x6d1   :  { %v554_v25 = vsel %vm136_vm8, %v2204_v12, %v533_v23  ;;  %v596_v12 = vperm.slane %v2114_v36, 3 }
 0x6d2   :  { %719 = vmatpush.msrb.mxu3 %v714_v22 }
 0x6d4   :  { %720 = vmatpush.msrb.mxu3 %v713_v17 }
 0x6d6   :  { %1725 = vmatmul.msk.f32.gmra.mxu2 %vm172_vm9, %v494_v16 }
 0x73a   :  { %v541_v24 = vpop.permute.xlu0 %540 }
 0x73b   :  { %v556_v26 = vsel %vm172_vm9, %v554_v25, %v541_v24 }
 0x751   :  { %v524_v19 = vpop.f32.mrf.mxu2 }
 0x752   :  { %548 = vrot.lane.b32.xlu2 %v524_v19, %s2762_s26 }
 0x759   :  { %v527_v20 = vpop.f32.mrf.mxu2 }
 0x75a   :  { %542 = vrot.lane.b32.xlu2 %v2221_v35, %s2760_s16  ;;  %550 = vrot.lane.b32.xlu0 %v527_v20, %s2762_s26 }
 0x7ac   :  { %v549_v27 = vpop.permute.xlu2 %548 }
 0x7ad   :  { %v559_v28 = vsel %vm558_vm10, %v556_v26, %v549_v27 }
 0x7ae   :  { %1726 = vmatmul.msk.f32.vlgmr.msrb.gmra.mxu0 %vm38_vm0, %v559_v28 }
 0x7b4   :  { %v543_v30 = vpop.permute.xlu2 %542 }
 0x7b5   :  { %v557_v31 = vsel %vm172_vm9, %v555_v56, %v543_v30  ;;  %v712_v30 = vld [vmem:[%s2756_s6 + $0x58] sm:$0xff]  ;;  %v711_v56 = vld [vmem:[%s2756_s6 + $0x50] sm:$0xff] }
 0x7b6   :  { %721 = vmatpush.msrb.mxu3 %v712_v30 }
 0x7b8   :  { %722 = vmatpush.msrb.mxu3 %v711_v56 }
 0x7cc   :  { %v551_v32 = vpop.permute.xlu0 %550 }
 0x7cd   :  { %v560_v33 = vsel %vm558_vm10, %v557_v31, %v551_v32  ;;  %v710_v31 = vld [vmem:[%s2756_s6 + $0x48] sm:$0xff]  ;;  %v709_v32 = vld [vmem:[%s2756_s6 + $0x40] sm:$0xff] }
 0x7ce   :  { %1727 = vmatmul.msk.f32.gmra.mxu0 %vm38_vm0, %v560_v33  ;;  %723 = vmatpush.msrb.mxu3 %v710_v31  ;;  %v708_v33 = vld [vmem:[%s2756_s6 + $0x38] sm:$0xff] }
 0x7d0   :  { %724 = vmatpush.msrb.mxu3 %v709_v32 }
 0x7d2   :  { %725 = vmatpush.msrb.mxu3 %v708_v33  ;;  %v2382_v33 = vld [vmem:[%s2752_s2 + $0x8] sm:$0xff] }
 0x82b   :  { %v588_v34 = vpop.f32.mrf.mxu0 }
 0x82c   :  { %v594_v35 = vadd.f32 %v588_v34, %v2078_v0  ;;  %v706_v34 = vld [vmem:[%s2756_s6 + $0x28] sm:$0xff] }
 0x82e   :  { %v2267_v37 = vadd.f32 %v596_v12, %v594_v35  ;;  %v705_v35 = vld [vmem:[%s2756_s6 + $0x20] sm:$0xff] }
 0x830   :  { %v599_v38 = vsel %vm38_vm0, %v2267_v37, 0.0 }
 0x831   :  { %600 = vadd.xlane.f32.xlu2 %v599_v38  ;;  %v704_v38 = vld [vmem:[%s2756_s6 + $0x18] sm:$0xff] }
 0x84b   :  { %v591_v39 = vpop.f32.mrf.mxu0 }
 0x84c   :  { %v595_v13 = vadd.f32 %v591_v39, %v2085_v2  ;;  %v703_v39 = vld [vmem:[%s2756_s6 + $0x10] sm:$0xff] }
 0x84e   :  { %v2272_v40 = vadd.f32 %v596_v12, %v595_v13  ;;  %v707_v12 = vld [vmem:[%s2756_s6 + $0x30] sm:$0xff]  ;;  %v702_v13 = vld [vmem:[%s2756_s6 + $0x8] sm:$0xff] }
 0x84f   :  { %726 = vmatpush.msrb.mxu3 %v707_v12 }
 0x850   :  { %v602_v41 = vsel %vm38_vm0, %v2272_v40, 0.0 }
 0x851   :  { %603 = vadd.xlane.f32.xlu0 %v602_v41  ;;  %727 = vmatpush.msrb.mxu3 %v706_v34  ;;  %v701_v41 = vld [vmem:[%s2756_s6] sm:$0xff] }
 0x853   :  { %728 = vmatpush.msrb.mxu3 %v705_v35  ;;  %v791_v35 = vperm.slane %v2382_v33, 0 }
 0x855   :  { %729 = vmatpush.msrb.mxu3 %v704_v38 }
 0x857   :  { %730 = vmatpush.msrb.mxu3 %v703_v39 }
 0x859   :  { %731 = vmatpush.msrb.mxu3 %v702_v13  ;;  %v794_v13 = vperm.slane %v2382_v33, 1 }
 0x85b   :  { %732 = vmatpush.msrb.mxu3 %v701_v41 }
 0x8a4   :  { %v601_v42 = vpop.xlane.xlu2 %600 }
 0x8a5   :  { %v605_v43 = vmul.f32 %v601_v42, %v2089_v10  ;;  %v653_v42 = vperm.slane %v2114_v36, 6 }
 0x8a7   :  { %v607_v0 = vsub.f32 %v2267_v37, %v605_v43 }
 0x8a9   :  { %v609_v44 = vmul.f32 %v607_v0, %v607_v0 }
 0x8ab   :  { %v611_v45 = vsel %vm38_vm0, %v609_v44, 0.0 }
 0x8ac   :  { %612 = vadd.xlane.f32.xlu1 %v611_v45 }
 0x8c4   :  { %v604_v46 = vpop.xlane.xlu0 %603 }
 0x8c5   :  { %v606_v47 = vmul.f32 %v604_v46, %v2089_v10 }
 0x8c7   :  { %v608_v2 = vsub.f32 %v2272_v40, %v606_v47 }
 0x8c9   :  { %v610_v48 = vmul.f32 %v608_v2, %v608_v2 }
 0x8cb   :  { %v614_v49 = vsel %vm38_vm0, %v610_v48, 0.0 }
 0x8cc   :  { %615 = vadd.xlane.f32.xlu2 %v614_v49 }
 0x91f   :  { %v613_v54 = vpop.xlane.xlu1 %612 }
 0x920   :  { %v617_v55 = vmul.f32 %v613_v54, %v2089_v10 }
 0x922   :  { %v619_v57 = vadd.f32 1e-05, %v617_v55 }
 0x924   :  { %1924 = vrsqrt.f32 %v619_v57  ;;  %vm627_vm12 = vweird.f32 %v619_v57 }
 0x92a   :  { %v1925_v59 = vpop.eup %1924 }
 0x92b   :  { %v622_v58 = vmul.f32 %v1925_v59, %v619_v57  ;;  %vm628_vm11 = vweird.f32 %v1925_v59 }
 0x92c   :  { %vm629_vm13 = vmor %vm627_vm12, %vm628_vm11 }
 0x92d   :  { %v623_v60 = vmul.f32 %v1925_v59, %v622_v58 }
 0x92f   :  { %v624_v61 = vmul.f32 0.5, %v623_v60 }
 0x931   :  { %v625_v62 = vsub.f32 1.5, %v624_v61 }
 0x933   :  { %v626_v63 = vmul.f32 %v1925_v59, %v625_v62 }
 0x935   :  { %v630_v3 = vsel %vm629_vm13, %v1925_v59, %v626_v63 }
 0x936   :  { %v641_v5 = vmul.f32 %v630_v3, %v607_v0 }
 0x938   :  { %v644_v7 = vmul.f32 %v643_v1, %v641_v5 }
 0x93a   :  { %v647_v8 = vadd.f32 %v646_v6, %v644_v7 }
 0x93c   :  { %1728 = vmatmul.msk.f32.vlgmr.msrb.gmra.mxu1 %vm38_vm0, %v647_v8 }
 0x93f   :  { %v616_v16 = vpop.xlane.xlu2 %615 }
 0x940   :  { %v618_v14 = vmul.f32 %v616_v16, %v2089_v10 }
 0x942   :  { %v620_v18 = vadd.f32 1e-05, %v618_v14 }
 0x944   :  { %1926 = vrsqrt.f32 %v620_v18  ;;  %vm637_vm15 = vweird.f32 %v620_v18 }
 0x94a   :  { %v1927_v19 = vpop.eup %1926 }
 0x94b   :  { %v632_v20 = vmul.f32 %v1927_v19, %v620_v18  ;;  %vm638_vm14 = vweird.f32 %v1927_v19 }
 0x94c   :  { %vm639_vm1 = vmor %vm637_vm15, %vm638_vm14 }
 0x94d   :  { %v633_v21 = vmul.f32 %v1927_v19, %v632_v20 }
 0x94f   :  { %v634_v23 = vmul.f32 0.5, %v633_v21 }
 0x951   :  { %v635_v24 = vsub.f32 1.5, %v634_v23  ;;  %v1734_v23 = vld [vmem:[%s2753_s3 + $0x38] sm:$0xff] }
 0x952   :  { %821 = vmatpush.msra.mxu2 %v1734_v23 }
 0x953   :  { %v636_v25 = vmul.f32 %v1927_v19, %v635_v24  ;;  %v1733_v24 = vld [vmem:[%s2753_s3 + $0x30] sm:$0xff] }
 0x954   :  { %822 = vmatpush.msra.mxu2 %v1733_v24 }
 0x955   :  { %v640_v26 = vsel %vm639_vm1, %v1927_v19, %v636_v25  ;;  %v1732_v25 = vld [vmem:[%s2753_s3 + $0x28] sm:$0xff] }
 0x956   :  { %v642_v27 = vmul.f32 %v640_v26, %v608_v2  ;;  %v1731_v26 = vld [vmem:[%s2753_s3 + $0x20] sm:$0xff]  ;;  %823 = vmatpush.msra.mxu2 %v1732_v25 }
 0x958   :  { %v645_v28 = vmul.f32 %v643_v1, %v642_v27  ;;  %v742_v1 = vperm.slane %v2114_v36, 7  ;;  %824 = vmatpush.msra.mxu2 %v1731_v26 }
 0x95a   :  { %v648_v29 = vadd.f32 %v646_v6, %v645_v28 }
 0x95c   :  { %1729 = vmatmul.msk.f32.gmra.mxu1 %vm38_vm0, %v648_v29 }
 0x9b9   :  { %v677_v43 = vpop.f32.mrf.mxu1 }
 0x9ba   :  { %v678_v0 = vadd.f32 %v677_v43, %v653_v42 }
 0x9bc   :  { %v685_v44 = vmul.f32 0.044715, %v678_v0  ;;  %v683_v49 = vmul.f32 0.5, %v678_v0 }
 0x9be   :  { %v687_v45 = vmul.f32 %v685_v44, %v678_v0 }
 0x9c0   :  { %v689_v46 = vmul.f32 %v687_v45, %v678_v0 }
 0x9c2   :  { %v691_v47 = vadd.f32 %v689_v46, %v678_v0 }
 0x9c4   :  { %v693_v2 = vmul.f32 0.7978846, %v691_v47 }
 0x9c6   :  { %1928 = vtanh.f32 %v693_v2 }
 0x9cc   :  { %v1929_v48 = vpop.eup %1928 }
 0x9cd   :  { %v697_v50 = vadd.f32 1.0, %v1929_v48 }
 0x9cf   :  { %v699_v51 = vmul.f32 %v697_v50, %v683_v49 }
 0x9d1   :  { %733 = vmatmul.f32.vlgmr.msrb.gmra.mxu3 %v699_v51 }
 0x9d9   :  { %v680_v52 = vpop.f32.mrf.mxu1 }
 0x9da   :  { %v681_v53 = vadd.f32 %v680_v52, %v653_v42 }
 0x9dc   :  { %v686_v54 = vmul.f32 0.044715, %v681_v53  ;;  %v684_v61 = vmul.f32 0.5, %v681_v53 }
 0x9de   :  { %v688_v55 = vmul.f32 %v686_v54, %v681_v53  ;;  %v802_v54 = vperm.slane %v2382_v33, 2 }
 0x9e0   :  { %v690_v57 = vmul.f32 %v688_v55, %v681_v53 }
 0x9e2   :  { %v692_v59 = vadd.f32 %v690_v57, %v681_v53 }
 0x9e4   :  { %v694_v58 = vmul.f32 0.7978846, %v692_v59 }
 0x9e6   :  { %1930 = vtanh.f32 %v694_v58 }
 0x9ec   :  { %v1931_v60 = vpop.eup %1930 }
 0x9ed   :  { %v698_v62 = vadd.f32 1.0, %v1931_v60 }
 0x9ef   :  { %v700_v63 = vmul.f32 %v698_v62, %v684_v61 }
 0x9f1   :  { %736 = vmatmul.f32.gmra.mxu3 %v700_v63 }
 0xa54   :  { %v734_v3 = vpop.f32.mrf.mxu3 }
 0xa55   :  { %v740_v5 = vadd.f32 %v734_v3, %v2267_v37 }
 0xa57   :  { %v2351_v6 = vadd.f32 %v742_v1, %v740_v5 }
 0xa59   :  { %v747_v7 = vsel %vm38_vm0, %v2351_v6, 0.0 }
 0xa5a   :  { %748 = vadd.xlane.f32.xlu0 %v747_v7 }
 0xa74   :  { %v737_v8 = vpop.f32.mrf.mxu3 }
 0xa75   :  { %v741_v11 = vadd.f32 %v737_v8, %v2272_v40 }
 0xa77   :  { %v2356_v15 = vadd.f32 %v742_v1, %v741_v11 }
 0xa79   :  { %v750_v22 = vsel %vm38_vm0, %v2356_v15, 0.0 }
 0xa7a   :  { %751 = vadd.xlane.f32.xlu2 %v750_v22 }
 0xacd   :  { %v749_v16 = vpop.xlane.xlu0 %748 }
 0xace   :  { %v753_v36 = vmul.f32 %v749_v16, %v2089_v10 }
 0xad0   :  { %v755_v37 = vsub.f32 %v2351_v6, %v753_v36 }
 0xad2   :  { %v757_v14 = vmul.f32 %v755_v37, %v755_v37 }
 0xad4   :  { %v759_v17 = vsel %vm38_vm0, %v757_v14, 0.0 }
 0xad5   :  { %760 = vadd.xlane.f32.xlu0 %v759_v17 }
 0xaed   :  { %v752_v18 = vpop.xlane.xlu2 %751 }
 0xaee   :  { %v754_v19 = vmul.f32 %v752_v18, %v2089_v10 }
 0xaf0   :  { %v756_v40 = vsub.f32 %v2356_v15, %v754_v19 }
 0xaf2   :  { %v758_v20 = vmul.f32 %v756_v40, %v756_v40 }
 0xaf4   :  { %v762_v21 = vsel %vm38_vm0, %v758_v20, 0.0 }
 0xaf5   :  { %763 = vadd.xlane.f32.xlu2 %v762_v21 }
 0xb48   :  { %v761_v27 = vpop.xlane.xlu0 %760 }
 0xb49   :  { %v765_v28 = vmul.f32 %v761_v27, %v2089_v10 }
 0xb4b   :  { %v767_v29 = vadd.f32 1e-05, %v765_v28 }
 0xb4d   :  { %1932 = vrsqrt.f32 %v767_v29  ;;  %vm775_vm3 = vweird.f32 %v767_v29 }
 0xb53   :  { %v1933_v30 = vpop.eup %1932 }
 0xb54   :  { %v770_v56 = vmul.f32 %v1933_v30, %v767_v29  ;;  %vm776_vm2 = vweird.f32 %v1933_v30 }
 0xb55   :  { %vm777_vm4 = vmor %vm775_vm3, %vm776_vm2 }
 0xb56   :  { %v771_v31 = vmul.f32 %v1933_v30, %v770_v56 }
 0xb58   :  { %v772_v32 = vmul.f32 0.5, %v771_v31 }
 0xb5a   :  { %v773_v12 = vsub.f32 1.5, %v772_v32 }
 0xb5c   :  { %v774_v34 = vmul.f32 %v1933_v30, %v773_v12 }
 0xb5e   :  { %v778_v38 = vsel %vm777_vm4, %v1933_v30, %v774_v34 }
 0xb5f   :  { %v789_v39 = vmul.f32 %v778_v38, %v755_v37 }
 0xb61   :  { %v792_v41 = vmul.f32 %v791_v35, %v789_v39 }
 0xb63   :  { %v795_v42 = vadd.f32 %v794_v13, %v792_v41 }
 0xb65   :  { %1735 = vmatmul.msk.f32.vlgmr.msra.gmra.mxu2 %vm38_vm0, %v795_v42 }
 0xb68   :  { %v764_v43 = vpop.xlane.xlu2 %763 }
 0xb69   :  { %v766_v0 = vmul.f32 %v764_v43, %v2089_v10 }
 0xb6b   :  { %v768_v44 = vadd.f32 1e-05, %v766_v0 }
 0xb6d   :  { %1934 = vrsqrt.f32 %v768_v44  ;;  %vm785_vm6 = vweird.f32 %v768_v44 }
 0xb73   :  { %v1935_v45 = vpop.eup %1934 }
 0xb74   :  { %v780_v46 = vmul.f32 %v1935_v45, %v768_v44  ;;  %vm786_vm5 = vweird.f32 %v1935_v45 }
 0xb75   :  { %vm787_vm7 = vmor %vm785_vm6, %vm786_vm5 }
 0xb76   :  { %v781_v47 = vmul.f32 %v1935_v45, %v780_v46 }
 0xb78   :  { %v782_v2 = vmul.f32 0.5, %v781_v47 }
 0xb7a   :  { %v783_v48 = vsub.f32 1.5, %v782_v2  ;;  %v1980_v2 = vld [vmem:[%s2751_s1 + $0x8] sm:$0xff] }
 0xb7c   :  { %v784_v49 = vmul.f32 %v1935_v45, %v783_v48 }
 0xb7e   :  { %v788_v50 = vsel %vm787_vm7, %v1935_v45, %v784_v49 }
 0xb7f   :  { %v790_v51 = vmul.f32 %v788_v50, %v756_v40 }
 0xb81   :  { %v793_v52 = vmul.f32 %v791_v35, %v790_v51 }
 0xb83   :  { %v796_v53 = vadd.f32 %v794_v13, %v793_v52 }
 0xb85   :  { %1736 = vmatmul.msk.f32.gmra.mxu2 %vm38_vm0, %v796_v53 }
 0xbe8   :  { %v826_v55 = vpop.f32.mrf.mxu2 }
 0xbe9   :  { %v827_v57 = vadd.f32 %v826_v55, %v802_v54 }
 0xbeb   :  { %834 = vrot.lane.b32.xlu0 %v827_v57, %s2010_s23 }
 0xbf3   :  { %930 = vrot.lane.b32.xlu0 %v827_v57, %s2011_s24 }
 0xc08   :  { %v829_v59 = vpop.f32.mrf.mxu2 }
 0xc09   :  { %v2392_v58 = vadd.f32 %v829_v59, %v802_v54  ;;  %v1981_v54 = vld [vmem:[%s2751_s1] sm:$0xff]  ;;  %s2764_s1 = smov 24  }
 0xc0b   :  { %836 = vrot.lane.b32.xlu1 %v2392_v58, %s2010_s23  ;;  %v2397_v60 = vpack.i.bf16 %v827_v57, %v2392_v58 }
 0xc0d   :  { %1867 = vrot.lane.b32.xlu0 %v2397_v60, %s2012_s29 }
 0xc13   :  { %934 = vrot.lane.b32.xlu1 %v827_v57, %s2009_s22 }
 0xc15   :  { %1136 = vrot.lane.b32.xlu0 %v2392_v58, %s2017_s0 }
 0xc1b   :  { %936 = vrot.lane.b32.xlu1 %v2392_v58, %s2009_s22 }
 0xc1d   :  { %1134 = vrot.lane.b32.xlu0 %v827_v57, %s2017_s0 }
 0xc23   :  { %1036 = vrot.lane.b32.xlu1 %v2392_v58, %s2013_s30 }
 0xc25   :  { %1130 = vrot.lane.b32.xlu0 %v827_v57, %s2018_s13 }
 0xc2b   :  { %1034 = vrot.lane.b32.xlu1 %v827_v57, %s2013_s30 }
 0xc33   :  { %1030 = vrot.lane.b32.xlu1 %v827_v57, %s2014_s10 }
 0xc3b   :  { %1132 = vrot.lane.b32.xlu1 %v2392_v58, %s2018_s13 }
 0xc5d   :  { %v835_v61 = vpop.permute.xlu0 %834 }
 0xc65   :  { %v931_v62 = vpop.permute.xlu0 %930 }
 0xc7d   :  { %v837_v63 = vpop.permute.xlu1 %836 }
 0xc7e   :  { %1737 = vmatpush.xpose.msk.msra.mxu0 %vm136_vm8, %v837_v63 }
 0xc7f   :  { %v1868_v1 = vpop.permute.xlu0 %1867 }
 0xc80   :  { %v1869_v3 = vunpack.i.l.bf16 %v1868_v1  ;;  %v1870_v5 = vunpack.i.h.bf16 %v1868_v1 }
 0xc82   :  { %1738 = vmatpush.xpose.msk.msra.mxu0 %vm136_vm8, %v835_v61  ;;  %921 = vmatpush.msra.mxu1 %v1869_v3 }
 0xc84   :  { %922 = vmatpush.msra.mxu1 %v1870_v5 }
 0xc85   :  { %v935_v7 = vpop.permute.xlu1 %934  ;;  %1739 = vmatmul.msk.f32.vlgmr.msra.gmra.mxu0 %vm136_vm8, %v827_v57 }
 0xc87   :  { %v1137_v8 = vpop.permute.xlu0 %1136 }
 0xc8d   :  { %v937_v11 = vpop.permute.xlu1 %936  ;;  %1740 = vmatmul.msk.f32.gmra.mxu0 %vm136_vm8, %v2392_v58 }
 0xc8e   :  { %1743 = vmatpush.xpose.msk.msrb.mxu2 %vm136_vm8, %v937_v11 }
 0xc8f   :  { %v1135_v16 = vpop.permute.xlu0 %1134 }
 0xc92   :  { %1744 = vmatpush.xpose.msk.msrb.mxu2 %vm136_vm8, %v935_v7 }
 0xc95   :  { %v1037_v22 = vpop.permute.xlu1 %1036  ;;  %1745 = vmatmul.msk.f32.vlgmr.msrb.gmra.mxu2 %vm136_vm8, %v931_v62 }
 0xc96   :  { %1755 = vmatpush.xpose.msk.msra.mxu2 %vm136_vm8, %v1137_v8  ;;  %1749 = vmatpush.xpose.msk.msrb.mxu1 %vm136_vm8, %v1037_v22 }
 0xc97   :  { %v1131_v38 = vpop.permute.xlu0 %1130 }
 0xc9a   :  { %1756 = vmatpush.xpose.msk.msra.mxu2 %vm136_vm8, %v1135_v16 }
 0xc9d   :  { %v1035_v36 = vpop.permute.xlu1 %1034 }
 0xc9e   :  { %1750 = vmatpush.xpose.msk.msrb.mxu1 %vm136_vm8, %v1035_v36 }
 0xca5   :  { %v1031_v35 = vpop.permute.xlu1 %1030 }
 0xcad   :  { %v1133_v39 = vpop.permute.xlu1 %1132 }
 0xd02   :  { %v863_v37 = vpop.f32.mrf.mxu0 }
 0xd03   :  { %v869_v14 = vmul.f32 0.35355338, %v863_v37 }
 0xd05   :  { %v871_v17 = vadd.f32 %v869_v14, %v2150_v4 }
 0xd07   :  { %v873_v18 = vsel %vm172_vm9, %v871_v17, -inf }
 0xd08   :  { %874 = vmax.xlane.f32.xlu2 %v873_v18 }
 0xd0a   :  { %v866_v19 = vpop.f32.mrf.mxu0 }
 0xd0b   :  { %v870_v40 = vmul.f32 0.35355338, %v866_v19 }
 0xd0d   :  { %v872_v20 = vadd.f32 %v870_v40, %v2157_v9 }
 0xd0f   :  { %v876_v21 = vsel %vm172_vm9, %v872_v20, -inf }
 0xd10   :  { %877 = vmax.xlane.f32.xlu2 %v876_v21 }
 0xd18   :  { %v963_v23 = vpop.f32.mrf.mxu2 }
 0xd19   :  { %v969_v24 = vmul.f32 0.35355338, %v963_v23 }
 0xd1b   :  { %v971_v25 = vadd.f32 %v969_v24, %v2150_v4 }
 0xd1d   :  { %v973_v26 = vsel %vm172_vm9, %v971_v25, -inf }
 0xd1e   :  { %974 = vmax.xlane.f32.xlu0 %v973_v26 }
 0xd28   :  { %932 = vrot.lane.b32.xlu2 %v2392_v58, %s2011_s24  ;;  %s2765_s24 = smov 16  }
 0xd7b   :  { %v875_v27 = vpop.xlane.xlu2 %874 }
 0xd7c   :  { %v879_v28 = vsub.f32 %v871_v17, %v875_v27 }
 0xd7e   :  { %v881_v29 = vmul.f32 1.442695, %v879_v28 }
 0xd80   :  { %1936 = vpow2.f32 %v881_v29 }
 0xd83   :  { %v878_v30 = vpop.xlane.xlu2 %877 }
 0xd84   :  { %v880_v56 = vsub.f32 %v872_v20, %v878_v30 }
 0xd86   :  { %v1937_v9 = vpop.eup %1936  ;;  %v883_v31 = vmul.f32 1.442695, %v880_v56 }
 0xd87   :  { %v885_v32 = vsel %vm172_vm9, %v1937_v9, 0.0 }
 0xd88   :  { %1938 = vpow2.f32 %v883_v31  ;;  %886 = vadd.xlane.f32.xlu2 %v885_v32 }
 0xd8b   :  { %v933_v12 = vpop.permute.xlu2 %932 }
 0xd8c   :  { %1746 = vmatmul.msk.f32.gmra.mxu2 %vm136_vm8, %v933_v12 }
 0xd8e   :  { %v1939_v4 = vpop.eup %1938 }
 0xd8f   :  { %v888_v34 = vsel %vm172_vm9, %v1939_v4, 0.0 }
 0xd90   :  { %889 = vadd.xlane.f32.xlu2 %v888_v34 }
 0xd91   :  { %v975_v46 = vpop.xlane.xlu0 %974 }
 0xd92   :  { %v979_v49 = vsub.f32 %v971_v25, %v975_v46 }
 0xd94   :  { %1757 = vmatmul.msk.f32.vlgmr.msra.gmra.mxu2 %vm136_vm8, %v1131_v38  ;;  %v981_v51 = vmul.f32 1.442695, %v979_v49 }
 0xd9c   :  { %1758 = vmatmul.msk.f32.gmra.mxu2 %vm136_vm8, %v1133_v39 }
 0xda8   :  { %1032 = vrot.lane.b32.xlu2 %v2392_v58, %s2014_s10 }
 0xdfb   :  { %v887_v13 = vpop.xlane.xlu2 %886 }
 0xdfc   :  { %1940 = vrcp.f32 %v887_v13 }
 0xe02   :  { %v1941_v41 = vpop.eup %1940 }
 0xe03   :  { %v893_v42 = vmul.f32 %v1941_v41, %v1937_v9  ;;  %v890_v43 = vpop.xlane.xlu2 %889 }
 0xe04   :  { %1942 = vrcp.f32 %v890_v43 }
 0xe05   :  { %1741 = vmatmul.msk.f32.vlgmr.msra.gmra.mxu1 %vm172_vm9, %v893_v42  ;;  %1944 = vpow2.f32 %v981_v51 }
 0xe0a   :  { %v1943_v0 = vpop.eup %1942 }
 0xe0b   :  { %v894_v44 = vmul.f32 %v1943_v0, %v1939_v4  ;;  %v1033_v57 = vpop.permute.xlu2 %1032  ;;  %v1945_v58 = vpop.eup %1944 }
 0xe0c   :  { %v985_v61 = vsel %vm172_vm9, %v1945_v58, 0.0 }
 0xe0d   :  { %1742 = vmatmul.msk.f32.gmra.mxu1 %vm172_vm9, %v894_v44 }
 0xe0f   :  { %v966_v45 = vpop.f32.mrf.mxu2 }
 0xe10   :  { %v970_v47 = vmul.f32 0.35355338, %v966_v45 }
 0xe12   :  { %v972_v48 = vadd.f32 %v1980_v2, %v970_v47 }
 0xe14   :  { %v976_v50 = vsel %vm172_vm9, %v972_v48, -inf }
 0xe15   :  { %977 = vmax.xlane.f32.xlu2 %v976_v50  ;;  %1751 = vmatmul.msk.f32.vlgmr.msrb.gmra.mxu1 %vm136_vm8, %v1031_v35 }
 0xe17   :  { %v1163_v52 = vpop.f32.mrf.mxu2 }
 0xe18   :  { %v1169_v53 = vmul.f32 0.35355338, %v1163_v52 }
 0xe1a   :  { %v1171_v55 = vadd.f32 %v1981_v54, %v1169_v53 }
 0xe1c   :  { %v1173_v59 = vsel %vm172_vm9, %v1171_v55, -inf }
 0xe1d   :  { %1174 = vmax.xlane.f32.xlu0 %v1173_v59  ;;  %1752 = vmatmul.msk.f32.gmra.mxu1 %vm136_vm8, %v1033_v57 }
 0xe1f   :  { %v1166_v22 = vpop.f32.mrf.mxu2 }
 0xe20   :  { %v1170_v37 = vmul.f32 0.35355338, %v1166_v22 }
 0xe22   :  { %v1172_v20 = vadd.f32 %v1980_v2, %v1170_v37 }
 0xe24   :  { %v1176_v24 = vsel %vm172_vm9, %v1172_v20, -inf }
 0xe25   :  { %986 = vadd.xlane.f32.xlu0 %v985_v61 }
 0xe82   :  { %v2454_v62 = vpop.f32.mrf.mxu1 }
 0xe88   :  { %v978_v7 = vpop.xlane.xlu2 %977 }
 0xe89   :  { %v980_v36 = vsub.f32 %v972_v48, %v978_v7 }
 0xe8a   :  { %v2456_v63 = vpop.f32.mrf.mxu1 }
 0xe8b   :  { %v983_v17 = vmul.f32 1.442695, %v980_v36 }
 0xe90   :  { %v1175_v1 = vpop.xlane.xlu0 %1174 }
 0xe91   :  { %v1179_v3 = vsub.f32 %v1171_v55, %v1175_v1 }
 0xe92   :  { %v1063_v5 = vpop.f32.mrf.mxu1 }
 0xe93   :  { %v1181_v8 = vmul.f32 1.442695, %v1179_v3  ;;  %v1069_v11 = vmul.f32 0.35355338, %v1063_v5 }
 0xe95   :  { %1946 = vpow2.f32 %v1181_v8  ;;  %v1071_v16 = vadd.f32 %v1981_v54, %v1069_v11 }
 0xe96   :  { %1948 = vpow2.f32 %v983_v17 }
 0xe97   :  { %v1073_v14 = vsel %vm172_vm9, %v1071_v16, -inf }
 0xe98   :  { %1074 = vmax.xlane.f32.xlu1 %v1073_v14  ;;  %v987_v56 = vpop.xlane.xlu0 %986 }
 0xe9a   :  { %v1066_v18 = vpop.f32.mrf.mxu1 }
 0xe9b   :  { %v1947_v19 = vpop.eup %1946  ;;  %v1070_v40 = vmul.f32 0.35355338, %v1066_v18  ;;  %v1764_v18 = vld [vmem:[%s2754_s4 + $0x38] sm:$0xff] }
 0xe9c   :  { %v1185_v21 = vsel %vm172_vm9, %v1947_v19, 0.0  ;;  %v1949_v26 = vpop.eup %1948  ;;  %1283 = vmatpush.msra.mxu1 %v1764_v18 }
 0xe9d   :  { %1186 = vadd.xlane.f32.xlu0 %v1185_v21  ;;  %v1072_v23 = vadd.f32 %v1980_v2, %v1070_v40  ;;  %v988_v27 = vsel %vm172_vm9, %v1949_v26, 0.0  ;;  %v1762_v40 = vld [vmem:[%s2754_s4 + $0x28] sm:$0xff] }
 0xe9f   :  { %v1076_v25 = vsel %vm172_vm9, %v1072_v23, -inf }
 0xea0   :  { %1177 = vmax.xlane.f32.xlu1 %v1176_v24  ;;  %1077 = vmax.xlane.f32.xlu2 %v1076_v25 }
 0xea8   :  { %989 = vadd.xlane.f32.xlu1 %v988_v27 }
 0xeb8   :  { %1872 = vrot.lane.b32.xlu2 %v2397_v60, %s2015_s11 }
 0xec0   :  { %1882 = vrot.lane.b32.xlu2 %v2397_v60, %s2020_s15  ;;  %s1688_s15 = sshll.u32 %s2759_s9, 4  ;;  %s1689_s15 = int_to_ptr.hbm [resolvable:$true] %s1688_s15 }
 0xec1   :  { %1877 = vrot.lane.b32.xlu1 %v2397_v60, %s2016_s12 }
 0xf0b   :  { %v1075_v28 = vpop.xlane.xlu1 %1074 }
 0xf0c   :  { %v1079_v29 = vsub.f32 %v1071_v16, %v1075_v28 }
 0xf0e   :  { %v1081_v30 = vmul.f32 1.442695, %v1079_v29 }
 0xf10   :  { %1950 = vpow2.f32 %v1081_v30  ;;  %v1187_v45 = vpop.xlane.xlu0 %1186 }
 0xf11   :  { %1952 = vrcp.f32 %v987_v56 }
 0xf13   :  { %v1178_v9 = vpop.xlane.xlu1 %1177  ;;  %v1078_v31 = vpop.xlane.xlu2 %1077 }
 0xf14   :  { %v1080_v32 = vsub.f32 %v1072_v23, %v1078_v31  ;;  %v1180_v34 = vsub.f32 %v1172_v20, %v1178_v9  ;;  %v1761_v20 = vld [vmem:[%s2754_s4 + $0x20] sm:$0xff] }
 0xf16   :  { %v1951_v12 = vpop.eup %1950  ;;  %v1083_v4 = vmul.f32 1.442695, %v1080_v32  ;;  %v1183_v38 = vmul.f32 1.442695, %v1180_v34 }
 0xf17   :  { %v1085_v35 = vsel %vm172_vm9, %v1951_v12, 0.0  ;;  %v1953_v60 = vpop.eup %1952 }
 0xf18   :  { %1086 = vadd.xlane.f32.xlu0 %v1085_v35  ;;  %1954 = vpow2.f32 %v1083_v4  ;;  %v993_v0 = vmul.f32 %v1953_v60, %v1945_v58 }
 0xf1b   :  { %v990_v39 = vpop.xlane.xlu1 %989  ;;  %v1873_v13 = vpop.permute.xlu2 %1872 }
 0xf1c   :  { %v1874_v41 = vunpack.i.l.bf16 %v1873_v13  ;;  %1956 = vrcp.f32 %v990_v39  ;;  %v1875_v42 = vunpack.i.h.bf16 %v1873_v13 }
 0xf1d   :  { %1958 = vpow2.f32 %v1183_v38 }
 0xf1e   :  { %1021 = vmatpush.msrb.mxu0 %v1874_v41  ;;  %v1955_v43 = vpop.eup %1954  ;;  %1960 = vrcp.f32 %v1187_v45 }
 0xf1f   :  { %v1088_v44 = vsel %vm172_vm9, %v1955_v43, 0.0 }
 0xf20   :  { %1022 = vmatpush.msrb.mxu0 %v1875_v42  ;;  %1089 = vadd.xlane.f32.xlu0 %v1088_v44 }
 0xf21   :  { %1747 = vmatmul.msk.f32.vlgmr.msrb.gmra.mxu0 %vm172_vm9, %v993_v0 }
 0xf22   :  { %v1957_v47 = vpop.eup %1956 }
 0xf23   :  { %v1883_v46 = vpop.permute.xlu2 %1882  ;;  %v1959_v48 = vpop.eup %1958  ;;  %v994_v50 = vmul.f32 %v1957_v47, %v1949_v26  ;;  %v1769_v47 = vld [vmem:[%s2755_s5 + $0x30] sm:$0xff] }
 0xf24   :  { %v1884_v2 = vunpack.i.l.bf16 %v1883_v46  ;;  %v1885_v49 = vunpack.i.h.bf16 %v1883_v46  ;;  %v1188_v51 = vsel %vm172_vm9, %v1959_v48, 0.0  ;;  %v1961_v52 = vpop.eup %1960  ;;  %v1770_v46 = vld [vmem:[%s2755_s5 + $0x38] sm:$0xff] }
 0xf25   :  { %v1193_v53 = vmul.f32 %v1961_v52, %v1947_v19  ;;  %v1763_v19 = vld [vmem:[%s2754_s4 + $0x30] sm:$0xff]  ;;  %v1788_v52 = vld [vmem:[%s2756_s6 + $0xf8] sm:$0xff] }
 0xf26   :  { %1221 = vmatpush.msra.mxu0 %v1884_v2  ;;  %1284 = vmatpush.msra.mxu1 %v1763_v19  ;;  %v1768_v2 = vld [vmem:[%s2755_s5 + $0x28] sm:$0xff] }
 0xf27   :  { %1419 = vmatpush.msrb.mxu2 %v1788_v52 }
 0xf28   :  { %1222 = vmatpush.msra.mxu0 %v1885_v49  ;;  %1189 = vadd.xlane.f32.xlu0 %v1188_v51 }
 0xf29   :  { %1748 = vmatmul.msk.f32.gmra.mxu0 %vm172_vm9, %v994_v50  ;;  %1285 = vmatpush.msra.mxu1 %v1762_v40 }
 0xf2b   :  { %1286 = vmatpush.msra.mxu1 %v1761_v20 }
 0xf31   :  { %1759 = vmatmul.msk.f32.vlgmr.msra.gmra.mxu0 %vm172_vm9, %v1193_v53  ;;  %v1787_v53 = vld [vmem:[%s2756_s6 + $0xf0] sm:$0xff] }
 0xf32   :  { %1420 = vmatpush.msrb.mxu2 %v1787_v53 }
 0xf33   :  { %v1878_v54 = vpop.permute.xlu1 %1877 }
 0xf34   :  { %v1879_v55 = vunpack.i.l.bf16 %v1878_v54  ;;  %v1880_v57 = vunpack.i.h.bf16 %v1878_v54  ;;  %v1786_v54 = vld [vmem:[%s2756_s6 + $0xe8] sm:$0xff] }
 0xf35   :  { %1421 = vmatpush.msrb.mxu2 %v1786_v54 }
 0xf36   :  { %1121 = vmatpush.msra.mxu3 %v1879_v55 }
 0xf38   :  { %1122 = vmatpush.msra.mxu3 %v1880_v57 }
 0xf3a   :  { %1373 = vmatpush.msrb.mxu3 %v1770_v46 }
 0xf3c   :  { %1374 = vmatpush.msrb.mxu3 %v1769_v47 }
 0xf3e   :  { %1375 = vmatpush.msrb.mxu3 %v1768_v2 }
 0xf8b   :  { %v1087_v59 = vpop.xlane.xlu0 %1086 }
 0xf8c   :  { %1962 = vrcp.f32 %v1087_v59  ;;  %v1785_v59 = vld [vmem:[%s2756_s6 + $0xe0] sm:$0xff] }
 0xf8d   :  { %1422 = vmatpush.msrb.mxu2 %v1785_v59 }
 0xf92   :  { %v1963_v58 = vpop.eup %1962 }
 0xf93   :  { %v1093_v61 = vmul.f32 %v1963_v58, %v1951_v12  ;;  %v1090_v1 = vpop.xlane.xlu0 %1089 }
 0xf94   :  { %1964 = vrcp.f32 %v1090_v1 }
 0xf95   :  { %1753 = vmatmul.msk.f32.vlgmr.msra.gmra.mxu3 %vm172_vm9, %v1093_v61 }
 0xf9a   :  { %v1965_v3 = vpop.eup %1964 }
 0xf9b   :  { %v1190_v5 = vpop.xlane.xlu0 %1189  ;;  %v1094_v7 = vmul.f32 %v1965_v3, %v1955_v43 }
 0xf9c   :  { %1966 = vrcp.f32 %v1190_v5 }
 0xf9d   :  { %1754 = vmatmul.msk.f32.gmra.mxu3 %vm172_vm9, %v1094_v7 }
 0xf9e   :  { %v1024_v8 = vpop.f32.mrf.mxu0 }
 0xf9f   :  { %1232 = vrot.lane.b32.xlu2 %v1024_v8, %s2019_s14 }
 0xfa2   :  { %v1967_v11 = vpop.eup %1966 }
 0xfa3   :  { %v1194_v22 = vmul.f32 %v1967_v11, %v1959_v48  ;;  %v1767_v48 = vld [vmem:[%s2755_s5 + $0x20] sm:$0xff] }
 0xfa4   :  { %1376 = vmatpush.msrb.mxu3 %v1767_v48 }
 0xfa5   :  { %1760 = vmatmul.msk.f32.gmra.mxu0 %vm172_vm9, %v1194_v22  ;;  %v1343_v22 = vperm.slane %v2382_v33, 4 }
 0xfa6   :  { %v1027_v16 = vpop.f32.mrf.mxu0 }
 0xfa7   :  { %1234 = vrot.lane.b32.xlu2 %v1027_v16, %s2019_s14 }
 0xfae   :  { %v1224_v36 = vpop.f32.mrf.mxu0 }
 0xfaf   :  { %1248 = vrot.lane.b32.xlu1 %v1224_v36, %s2764_s1 }
 0xff9   :  { %v1233_v21 = vpop.permute.xlu2 %1232 }
 0xffa   :  { %v1254_v23 = vsel %vm136_vm8, %v2454_v62, %v1233_v21  ;;  %v1296_v62 = vperm.slane %v2382_v33, 3 }
0x1001   :  { %v1235_v27 = vpop.permute.xlu2 %1234 }
0x1002   :  { %v1255_v29 = vsel %vm136_vm8, %v2456_v63, %v1235_v27  ;;  %v1784_v27 = vld [vmem:[%s2756_s6 + $0xd8] sm:$0xff] }
0x1003   :  { %1423 = vmatpush.msrb.mxu2 %v1784_v27 }
0x1018   :  { %v1124_v37 = vpop.f32.mrf.mxu3 }
0x1019   :  { %1240 = vrot.lane.b32.xlu0 %v1124_v37, %s2765_s24 }
0x1020   :  { %v1127_v14 = vpop.f32.mrf.mxu3 }
0x1021   :  { %1242 = vrot.lane.b32.xlu1 %v1127_v14, %s2765_s24  ;;  %v1249_v25 = vpop.permute.xlu1 %1248 }
0x1022   :  { %v1227_v17 = vpop.f32.mrf.mxu0 }
0x1023   :  { %1250 = vrot.lane.b32.xlu2 %v1227_v17, %s2764_s1  ;;  %v1346_v17 = vperm.slane %v2382_v33, 5 }
0x107d   :  { %v1251_v56 = vpop.permute.xlu2 %1250 }
0x108b   :  { %v1241_v24 = vpop.permute.xlu0 %1240 }
0x108c   :  { %v1256_v26 = vsel %vm172_vm9, %v1254_v23, %v1241_v24 }
0x108d   :  { %v1258_v28 = vsel %vm558_vm10, %v1256_v26, %v1249_v25 }
0x108e   :  { %1765 = vmatmul.msk.f32.vlgmr.msra.gmra.mxu1 %vm38_vm0, %v1258_v28  ;;  %v1783_v28 = vld [vmem:[%s2756_s6 + $0xd0] sm:$0xff] }
0x108f   :  { %1424 = vmatpush.msrb.mxu2 %v1783_v28 }
0x1093   :  { %v1243_v30 = vpop.permute.xlu1 %1242 }
0x1094   :  { %v1257_v9 = vsel %vm172_vm9, %v1255_v29, %v1243_v30  ;;  %v1782_v29 = vld [vmem:[%s2756_s6 + $0xc8] sm:$0xff]  ;;  %v1781_v30 = vld [vmem:[%s2756_s6 + $0xc0] sm:$0xff] }
0x1095   :  { %v1259_v31 = vsel %vm558_vm10, %v1257_v9, %v1251_v56  ;;  %1425 = vmatpush.msrb.mxu2 %v1782_v29  ;;  %v1780_v56 = vld [vmem:[%s2756_s6 + $0xb8] sm:$0xff]  ;;  %v1779_v9 = vld [vmem:[%s2756_s6 + $0xb0] sm:$0xff]  ;;  %v1506_v29 = vld [vmem:[%s2758_s8 + $0x40] sm:$0xff] }
0x1096   :  { %1766 = vmatmul.msk.f32.gmra.mxu1 %vm38_vm0, %v1259_v31  ;;  %v1778_v31 = vld [vmem:[%s2756_s6 + $0xa8] sm:$0xff] }
0x1097   :  { %1426 = vmatpush.msrb.mxu2 %v1781_v30  ;;  %v1522_v30 = vld [vmem:[%s2758_s8 + $0xc0] sm:$0xff] }
0x1099   :  { %1427 = vmatpush.msrb.mxu2 %v1780_v56 }
0x109b   :  { %1428 = vmatpush.msrb.mxu2 %v1779_v9 }
0x109d   :  { %1429 = vmatpush.msrb.mxu2 %v1778_v31  ;;  %v1505_v31 = vld [vmem:[%s2758_s8 + $0x38] sm:$0xff] }
0x110b   :  { %v1288_v32 = vpop.f32.mrf.mxu1 }
0x110c   :  { %v1294_v12 = vadd.f32 %v1288_v32, %v2351_v6  ;;  %v1776_v32 = vld [vmem:[%s2756_s6 + $0x98] sm:$0xff] }
0x110e   :  { %v2508_v4 = vadd.f32 %v1296_v62, %v1294_v12  ;;  %v1775_v12 = vld [vmem:[%s2756_s6 + $0x90] sm:$0xff] }
0x1110   :  { %v1299_v34 = vsel %vm38_vm0, %v2508_v4, 0.0 }
0x1111   :  { %1300 = vadd.xlane.f32.xlu1 %v1299_v34  ;;  %v1774_v34 = vld [vmem:[%s2756_s6 + $0x88] sm:$0xff] }
0x1113   :  { %v1291_v63 = vpop.f32.mrf.mxu1 }
0x1114   :  { %v1295_v35 = vadd.f32 %v1291_v63, %v2356_v15  ;;  %v1773_v63 = vld [vmem:[%s2756_s6 + $0x80] sm:$0xff] }
0x1116   :  { %v2513_v38 = vadd.f32 %v1296_v62, %v1295_v35  ;;  %v1777_v62 = vld [vmem:[%s2756_s6 + $0xa0] sm:$0xff]  ;;  %v1354_v35 = vperm.slane %v2382_v33, 6 }
0x1117   :  { %1430 = vmatpush.msrb.mxu2 %v1777_v62  ;;  %v1521_v62 = vld [vmem:[%s2758_s8 + $0xb8] sm:$0xff] }
0x1118   :  { %v1302_v39 = vsel %vm38_vm0, %v2513_v38, 0.0 }
0x1119   :  { %1303 = vadd.xlane.f32.xlu0 %v1302_v39  ;;  %1431 = vmatpush.msrb.mxu2 %v1776_v32 }
0x111b   :  { %1432 = vmatpush.msrb.mxu2 %v1775_v12  ;;  %v1504_v12 = vld [vmem:[%s2758_s8 + $0x30] sm:$0xff] }
0x111d   :  { %1433 = vmatpush.msrb.mxu2 %v1774_v34  ;;  %v1520_v34 = vld [vmem:[%s2758_s8 + $0xb0] sm:$0xff] }
0x111f   :  { %1434 = vmatpush.msrb.mxu2 %v1773_v63  ;;  %v1503_v63 = vld [vmem:[%s2758_s8 + $0x28] sm:$0xff] }
0x1184   :  { %v1301_v13 = vpop.xlane.xlu1 %1300 }
0x1185   :  { %v1305_v60 = vmul.f32 %v1301_v13, %v2089_v10 }
0x1187   :  { %v1307_v6 = vsub.f32 %v2508_v4, %v1305_v60 }
0x1189   :  { %v1309_v41 = vmul.f32 %v1307_v6, %v1307_v6 }
0x118b   :  { %v1311_v42 = vsel %vm38_vm0, %v1309_v41, 0.0 }
0x118c   :  { %1312 = vadd.xlane.f32.xlu2 %v1311_v42  ;;  %v1304_v43 = vpop.xlane.xlu0 %1303 }
0x118d   :  { %v1306_v0 = vmul.f32 %v1304_v43, %v2089_v10 }
0x118f   :  { %v1308_v15 = vsub.f32 %v2513_v38, %v1306_v0 }
0x1191   :  { %v1310_v44 = vmul.f32 %v1308_v15, %v1308_v15 }
0x1193   :  { %v1314_v45 = vsel %vm38_vm0, %v1310_v44, 0.0 }
0x1194   :  { %1315 = vadd.xlane.f32.xlu1 %v1314_v45 }
0x11ff   :  { %v1313_v49 = vpop.xlane.xlu2 %1312 }
0x1200   :  { %v1317_v50 = vmul.f32 %v1313_v49, %v2089_v10 }
0x1202   :  { %v1319_v51 = vadd.f32 1e-05, %v1317_v50 }
0x1204   :  { %1968 = vrsqrt.f32 %v1319_v51  ;;  %vm1327_vm9 = vweird.f32 %v1319_v51 }
0x1207   :  { %v1316_v55 = vpop.xlane.xlu1 %1315 }
0x1208   :  { %v1318_v57 = vmul.f32 %v1316_v55, %v2089_v10 }
0x120a   :  { %v1969_v58 = vpop.eup %1968  ;;  %v1320_v1 = vadd.f32 1e-05, %v1318_v57  ;;  %v1444_v57 = vperm.slane %v2382_v33, 7  ;;  %v1529_v33 = vld [vmem:[%s2758_s8 + $0xf8] sm:$0xff] }
0x120b   :  { %v1322_v61 = vmul.f32 %v1969_v58, %v1319_v51  ;;  %vm1328_vm8 = vweird.f32 %v1969_v58  ;;  %1807 = vmatpush.xpose.msk.msrb.mxu1 %vm38_vm0, %v1529_v33 }
0x120c   :  { %1970 = vrsqrt.f32 %v1320_v1  ;;  %vm1329_vm10 = vmor %vm1327_vm9, %vm1328_vm8  ;;  %vm1337_vm12 = vweird.f32 %v1320_v1 }
0x120d   :  { %v1323_v3 = vmul.f32 %v1969_v58, %v1322_v61 }
0x120f   :  { %v1324_v5 = vmul.f32 0.5, %v1323_v3 }
0x1211   :  { %v1325_v7 = vsub.f32 1.5, %v1324_v5 }
0x1212   :  { %v1971_v8 = vpop.eup %1970 }
0x1213   :  { %v1326_v11 = vmul.f32 %v1969_v58, %v1325_v7  ;;  %v1332_v16 = vmul.f32 %v1971_v8, %v1320_v1  ;;  %vm1338_vm11 = vweird.f32 %v1971_v8 }
0x1214   :  { %vm1339_vm13 = vmor %vm1337_vm12, %vm1338_vm11 }
0x1215   :  { %v1330_v36 = vsel %vm1329_vm10, %v1969_v58, %v1326_v11  ;;  %v1333_v14 = vmul.f32 %v1971_v8, %v1332_v16  ;;  %v1513_v11 = vld [vmem:[%s2758_s8 + $0x78] sm:$0xff]  ;;  %v1527_v16 = vld [vmem:[%s2758_s8 + $0xe8] sm:$0xff] }
0x1216   :  { %v1341_v37 = vmul.f32 %v1330_v36, %v1307_v6  ;;  %1789 = vmatpush.xpose.msk.msrb.mxu0 %vm38_vm0, %v1513_v11  ;;  %v1510_v36 = vld [vmem:[%s2758_s8 + $0x60] sm:$0xff] }
0x1217   :  { %v1334_v19 = vmul.f32 0.5, %v1333_v14  ;;  %v1509_v14 = vld [vmem:[%s2758_s8 + $0x58] sm:$0xff] }
0x1218   :  { %v1344_v18 = vmul.f32 %v1343_v22, %v1341_v37  ;;  %v1526_v37 = vld [vmem:[%s2758_s8 + $0xe0] sm:$0xff] }
0x1219   :  { %v1335_v40 = vsub.f32 1.5, %v1334_v19 }
0x121a   :  { %v1347_v20 = vadd.f32 %v1346_v17, %v1344_v18 }
0x121b   :  { %v1336_v21 = vmul.f32 %v1971_v8, %v1335_v40 }
0x121c   :  { %1771 = vmatmul.msk.f32.vlgmr.msrb.gmra.mxu3 %vm38_vm0, %v1347_v20  ;;  %v1508_v20 = vld [vmem:[%s2758_s8 + $0x50] sm:$0xff] }
0x121d   :  { %v1340_v23 = vsel %vm1339_vm13, %v1971_v8, %v1336_v21  ;;  %v1524_v21 = vld [vmem:[%s2758_s8 + $0xd0] sm:$0xff] }
0x121e   :  { %v1342_v24 = vmul.f32 %v1340_v23, %v1308_v15 }
0x1220   :  { %v1345_v25 = vmul.f32 %v1343_v22, %v1342_v24  ;;  %v1511_v22 = vld [vmem:[%s2758_s8 + $0x68] sm:$0xff] }
0x1222   :  { %v1348_v26 = vadd.f32 %v1346_v17, %v1345_v25  ;;  %v1525_v17 = vld [vmem:[%s2758_s8 + $0xd8] sm:$0xff]  ;;  %v1507_v25 = vld [vmem:[%s2758_s8 + $0x48] sm:$0xff] }
0x1224   :  { %1772 = vmatmul.msk.f32.gmra.mxu3 %vm38_vm0, %v1348_v26  ;;  %v1523_v26 = vld [vmem:[%s2758_s8 + $0xc8] sm:$0xff] }
0x129f   :  { %v1378_v39 = vpop.f32.mrf.mxu3 }
0x12a0   :  { %v1379_v13 = vadd.f32 %v1378_v39, %v1354_v35  ;;  %v1502_v39 = vld [vmem:[%s2758_s8 + $0x20] sm:$0xff] }
0x12a2   :  { %v1386_v60 = vmul.f32 0.044715, %v1379_v13  ;;  %v1384_v48 = vmul.f32 0.5, %v1379_v13 }
0x12a4   :  { %v1388_v6 = vmul.f32 %v1386_v60, %v1379_v13  ;;  %v1501_v60 = vld [vmem:[%s2758_s8 + $0x18] sm:$0xff] }
0x12a6   :  { %v1390_v41 = vmul.f32 %v1388_v6, %v1379_v13  ;;  %v1517_v6 = vld [vmem:[%s2758_s8 + $0x98] sm:$0xff] }
0x12a7   :  { %v1381_v42 = vpop.f32.mrf.mxu3 }
0x12a8   :  { %v1392_v43 = vadd.f32 %v1390_v41, %v1379_v13  ;;  %v1382_v0 = vadd.f32 %v1381_v42, %v1354_v35  ;;  %v1519_v35 = vld [vmem:[%s2758_s8 + $0xa8] sm:$0xff]  ;;  %v1518_v13 = vld [vmem:[%s2758_s8 + $0xa0] sm:$0xff]  ;;  %v1500_v41 = vld [vmem:[%s2758_s8 + $0x10] sm:$0xff] }
0x12a9   :  { %v1516_v42 = vld [vmem:[%s2758_s8 + $0x90] sm:$0xff] }
0x12aa   :  { %v1394_v15 = vmul.f32 0.7978846, %v1392_v43  ;;  %v1387_v44 = vmul.f32 0.044715, %v1382_v0  ;;  %v1385_v53 = vmul.f32 0.5, %v1382_v0  ;;  %v1499_v43 = vld [vmem:[%s2758_s8 + $0x8] sm:$0xff] }
0x12ac   :  { %1972 = vtanh.f32 %v1394_v15  ;;  %v1389_v45 = vmul.f32 %v1387_v44, %v1382_v0  ;;  %v1498_v15 = vld [vmem:[%s2758_s8] sm:$0xff] }
0x12ad   :  { %v1514_v44 = vld [vmem:[%s2758_s8 + $0x80] sm:$0xff] }
0x12ae   :  { %v1391_v46 = vmul.f32 %v1389_v45, %v1382_v0 }
0x12b0   :  { %v1393_v47 = vadd.f32 %v1391_v46, %v1382_v0  ;;  %v1515_v0 = vld [vmem:[%s2758_s8 + $0x88] sm:$0xff] }
0x12b2   :  { %v1973_v2 = vpop.eup %1972  ;;  %v1395_v50 = vmul.f32 0.7978846, %v1393_v47 }
0x12b3   :  { %v1398_v49 = vadd.f32 1.0, %v1973_v2 }
0x12b4   :  { %1974 = vtanh.f32 %v1395_v50 }
0x12b5   :  { %v1400_v51 = vmul.f32 %v1398_v49, %v1384_v48 }
0x12b7   :  { %1435 = vmatmul.f32.vlgmr.msrb.gmra.mxu2 %v1400_v51 }
0x12ba   :  { %v1975_v52 = vpop.eup %1974 }
0x12bb   :  { %v1399_v54 = vadd.f32 1.0, %v1975_v52 }
0x12bd   :  { %v1401_v55 = vmul.f32 %v1399_v54, %v1385_v53  ;;  %v1447_v54 = vld [vmem:[%s2757_s7] sm:$0x3]  ;;  %s2023_s7 = smov [#allocation2]  }
0x12be   :  { %s1686_s13 = sshll.u32 %s2023_s7, 4  ;;  %s1687_s13 = int_to_ptr.vmem [resolvable:$true] %s1686_s13 }
0x12bf   :  { %1438 = vmatmul.f32.gmra.mxu2 %v1401_v55 }
0x133a   :  { %v1436_v59 = vpop.f32.mrf.mxu2 }
0x133b   :  { %v1442_v58 = vadd.f32 %v1436_v59, %v2508_v4  ;;  %v1512_v4 = vld [vmem:[%s2758_s8 + $0x70] sm:$0xff] }
0x133c   :  { %1790 = vmatpush.xpose.msk.msrb.mxu0 %vm38_vm0, %v1512_v4 }
0x133d   :  { %v1445_v61 = vadd.f32 %v1444_v57, %v1442_v58  ;;  %v1492_v58 = vperm.slane %v1447_v54, 0 }
0x133f   :  { %v1448_v1 = vsel %vm38_vm0, %v1445_v61, 0.0 }
0x1340   :  { %1449 = vadd.xlane.f32.xlu2 %v1448_v1  ;;  %1791 = vmatpush.xpose.msk.msrb.mxu0 %vm38_vm0, %v1511_v22 }
0x1342   :  { %v1439_v3 = vpop.f32.mrf.mxu2 }
0x1343   :  { %v1443_v5 = vadd.f32 %v1439_v3, %v2513_v38  ;;  %v1528_v38 = vld [vmem:[%s2758_s8 + $0xf0] sm:$0xff] }
0x1344   :  { %1808 = vmatpush.xpose.msk.msrb.mxu1 %vm38_vm0, %v1528_v38  ;;  %1792 = vmatpush.xpose.msk.msrb.mxu0 %vm38_vm0, %v1510_v36 }
0x1345   :  { %v1446_v7 = vadd.f32 %v1444_v57, %v1443_v5  ;;  %v1495_v5 = vperm.slane %v1447_v54, 1 }
0x1347   :  { %v1451_v8 = vsel %vm38_vm0, %v1446_v7, 0.0 }
0x1348   :  { %1452 = vadd.xlane.f32.xlu0 %v1451_v8  ;;  %1809 = vmatpush.xpose.msk.msrb.mxu1 %vm38_vm0, %v1527_v16 }
0x1349   :  { %1793 = vmatpush.xpose.msk.msrb.mxu0 %vm38_vm0, %v1509_v14 }
0x134c   :  { %1810 = vmatpush.xpose.msk.msrb.mxu1 %vm38_vm0, %v1526_v37 }
0x134d   :  { %1794 = vmatpush.xpose.msk.msrb.mxu0 %vm38_vm0, %v1508_v20 }
0x1350   :  { %1811 = vmatpush.xpose.msk.msrb.mxu1 %vm38_vm0, %v1525_v17 }
0x1351   :  { %1795 = vmatpush.xpose.msk.msrb.mxu0 %vm38_vm0, %v1507_v25 }
0x1354   :  { %1812 = vmatpush.xpose.msk.msrb.mxu1 %vm38_vm0, %v1524_v21 }
0x1355   :  { %1796 = vmatpush.xpose.msk.msrb.mxu0 %vm38_vm0, %v1506_v29 }
0x1358   :  { %1813 = vmatpush.xpose.msk.msrb.mxu1 %vm38_vm0, %v1523_v26 }
0x1359   :  { %1797 = vmatpush.xpose.msk.msrb.mxu0 %vm38_vm0, %v1505_v31 }
0x135c   :  { %1814 = vmatpush.xpose.msk.msrb.mxu1 %vm38_vm0, %v1522_v30 }
0x135d   :  { %1798 = vmatpush.xpose.msk.msrb.mxu0 %vm38_vm0, %v1504_v12 }
0x1360   :  { %1815 = vmatpush.xpose.msk.msrb.mxu1 %vm38_vm0, %v1521_v62 }
0x1361   :  { %1799 = vmatpush.xpose.msk.msrb.mxu0 %vm38_vm0, %v1503_v63 }
0x1364   :  { %1816 = vmatpush.xpose.msk.msrb.mxu1 %vm38_vm0, %v1520_v34 }
0x1365   :  { %1800 = vmatpush.xpose.msk.msrb.mxu0 %vm38_vm0, %v1502_v39 }
0x1368   :  { %1817 = vmatpush.xpose.msk.msrb.mxu1 %vm38_vm0, %v1519_v35 }
0x1369   :  { %1801 = vmatpush.xpose.msk.msrb.mxu0 %vm38_vm0, %v1501_v60 }
0x136c   :  { %1818 = vmatpush.xpose.msk.msrb.mxu1 %vm38_vm0, %v1518_v13 }
0x136d   :  { %1802 = vmatpush.xpose.msk.msrb.mxu0 %vm38_vm0, %v1500_v41 }
0x1370   :  { %1819 = vmatpush.xpose.msk.msrb.mxu1 %vm38_vm0, %v1517_v6 }
0x1371   :  { %1803 = vmatpush.xpose.msk.msrb.mxu0 %vm38_vm0, %v1499_v43 }
0x1374   :  { %1820 = vmatpush.xpose.msk.msrb.mxu1 %vm38_vm0, %v1516_v42 }
0x1375   :  { %1804 = vmatpush.xpose.msk.msrb.mxu0 %vm38_vm0, %v1498_v15 }
0x1378   :  { %1821 = vmatpush.xpose.msk.msrb.mxu1 %vm38_vm0, %v1515_v0 }
0x137c   :  { %1822 = vmatpush.xpose.msk.msrb.mxu1 %vm38_vm0, %v1514_v44 }
0x13b3   :  { %v1450_v18 = vpop.xlane.xlu2 %1449 }
0x13b4   :  { %v1454_v19 = vmul.f32 %v1450_v18, %v2089_v10 }
0x13b6   :  { %v2636_v40 = vsub.f32 %v1445_v61, %v1454_v19 }
0x13b8   :  { %v1458_v23 = vmul.f32 %v2636_v40, %v2636_v40 }
0x13ba   :  { %v1460_v24 = vsel %vm38_vm0, %v1458_v23, 0.0 }
0x13bb   :  { %1461 = vadd.xlane.f32.xlu1 %v1460_v24  ;;  %v1453_v27 = vpop.xlane.xlu0 %1452 }
0x13bc   :  { %v1455_v28 = vmul.f32 %v1453_v27, %v2089_v10 }
0x13be   :  { %v2664_v56 = vsub.f32 %v1446_v7, %v1455_v28 }
0x13c0   :  { %v1459_v9 = vmul.f32 %v2664_v56, %v2664_v56 }
0x13c2   :  { %v1463_v32 = vsel %vm38_vm0, %v1459_v9, 0.0 }
0x13c3   :  { %1464 = vadd.xlane.f32.xlu2 %v1463_v32 }
0x142e   :  { %v1462_v45 = vpop.xlane.xlu1 %1461 }
0x142f   :  { %v1466_v46 = vmul.f32 %v1462_v45, %v2089_v10 }
0x1431   :  { %v1468_v47 = vadd.f32 1e-05, %v1466_v46 }
0x1433   :  { %1976 = vrsqrt.f32 %v1468_v47  ;;  %vm1476_vm15 = vweird.f32 %v1468_v47 }
0x1436   :  { %v1465_v2 = vpop.xlane.xlu2 %1464 }
0x1437   :  { %v1467_v48 = vmul.f32 %v1465_v2, %v2089_v10 }
0x1439   :  { %v1977_v49 = vpop.eup %1976  ;;  %v1469_v51 = vadd.f32 1e-05, %v1467_v48 }
0x143a   :  { %v1471_v50 = vmul.f32 %v1977_v49, %v1468_v47  ;;  %vm1477_vm14 = vweird.f32 %v1977_v49 }
0x143b   :  { %1978 = vrsqrt.f32 %v1469_v51  ;;  %vm1478_vm1 = vmor %vm1476_vm15, %vm1477_vm14  ;;  %vm1486_vm3 = vweird.f32 %v1469_v51 }
0x143c   :  { %v1472_v52 = vmul.f32 %v1977_v49, %v1471_v50 }
0x143e   :  { %v1473_v53 = vmul.f32 0.5, %v1472_v52 }
0x1440   :  { %v1474_v55 = vsub.f32 1.5, %v1473_v53 }
0x1441   :  { %v1979_v57 = vpop.eup %1978 }
0x1442   :  { %v1475_v59 = vmul.f32 %v1977_v49, %v1474_v55  ;;  %v1481_v61 = vmul.f32 %v1979_v57, %v1469_v51  ;;  %vm1487_vm2 = vweird.f32 %v1979_v57 }
0x1443   :  { %vm1488_vm4 = vmor %vm1486_vm3, %vm1487_vm2 }
0x1444   :  { %v1479_v1 = vsel %vm1478_vm1, %v1977_v49, %v1475_v59  ;;  %v1482_v3 = vmul.f32 %v1979_v57, %v1481_v61 }
0x1445   :  { %v1490_v10 = vmul.f32 %v1479_v1, %v2636_v40 }
0x1446   :  { %v1483_v8 = vmul.f32 0.5, %v1482_v3 }
0x1447   :  { %v1493_v7 = vmul.f32 %v1492_v58, %v1490_v10 }
0x1448   :  { %v1484_v11 = vsub.f32 1.5, %v1483_v8 }
0x1449   :  { %v1496_v33 = vadd.f32 %v1495_v5, %v1493_v7 }
0x144a   :  { %v1485_v4 = vmul.f32 %v1979_v57, %v1484_v11 }
0x144b   :  { %1805 = vmatmul.msk.f32.vlgmr.msrb.gmra.mxu0 %vm38_vm0, %v1496_v33  ;;  %1823 = vmatmul.msk.f32.vlgmr.msrb.gmra.mxu1 %vm38_vm0, %v1496_v33 }
0x144c   :  { %v1489_v38 = vsel %vm1488_vm4, %v1979_v57, %v1485_v4 }
0x144d   :  { %v1491_v22 = vmul.f32 %v1489_v38, %v2664_v56 }
0x144f   :  { %v1494_v16 = vmul.f32 %v1492_v58, %v1491_v22 }
0x1451   :  { %v1497_v36 = vadd.f32 %v1495_v5, %v1494_v16 }
0x1453   :  { %1806 = vmatmul.msk.f32.gmra.mxu0 %vm38_vm0, %v1497_v36  ;;  %1824 = vmatmul.msk.f32.gmra.mxu1 %vm38_vm0, %v1497_v36 }
0x14c8   :  { %v1649_v37 = vpop.f32.mrf.mxu0  ;;  %v1672_v14 = vpop.f32.mrf.mxu1 }
0x14c9   :  { %1678 = vst [vmem:[#allocation2] sm:$0xff] %v1649_v37 }
0x14ca   :  { %1679 = vst [vmem:[#allocation2 + $0x8] sm:$0xff] %v1672_v14 }
0x14d0   :  { %v1652_v17 = vpop.f32.mrf.mxu0  ;;  %v1675_v18 = vpop.f32.mrf.mxu1 }
0x14d1   :  { %1680 = vst [vmem:[#allocation2 + $0x10] sm:$0xff] %v1652_v17 }
0x14d2   :  { %1681 = vst [vmem:[#allocation2 + $0x18] sm:$0xff] %v1675_v18 }
0x14d3   :  { %1694 = dma.vmem_to_hbm [thread:$0]  %s1687_s13, 512, %s1689_s15, [#allocation3], %s2024_s21, %s2024_s21, %s2765_s24  }
0x14d4   :  { %2006 = dma.done.wait [#allocation3], 512  }
0x14d5   :  { %2007 = vsyncadd [#allocation3], 4294966784 }
0x14d6   :  { %1699 = vsyncpa [#allocation3], 1 }

</bundles_post_ra>
